<compile_context>
chip_gen: v5e
topology: v5e:2x2
jax: 0.10.0
libtpu: 0.0.40
codegen_flags: <defaults>
</compile_context>

<pallas_src>
import functools

import jax
import jax.numpy as jnp
import numpy as np
from jax.experimental import pallas as pl
from jax.experimental.pallas import tpu as pltpu

NEG_SLOPE = 0.2
BN_EPS = 1e-5


def _leaky_relu(x, slope=NEG_SLOPE):
    return jnp.where(x >= 0, x, slope * x)


def _round_up(x, m):
    return (x + m - 1) // m * m


# ----------------------------------------------------------------------------
# Shared in-kernel hidden computation (channels-first / pixels-on-lanes)
# ----------------------------------------------------------------------------

def _hidden_t(x_ref, w1t_ref, b1_ref, w2t_ref):
    """h2^T = W2^T @ LeakyReLU(W1^T @ x^T + b1).

    x_ref:   (cin, tm) f32   (pixels on lanes)
    w1t_ref: (ndf, cin) f32
    b1_ref:  (ndf, 1)  f32
    w2t_ref: (c2, ndf) bf16
    returns: (c2, tm)  f32
    """
    x = x_ref[...]                                          # (cin, tm) f32
    cin = x.shape[0]
    # First 1x1 conv (K=cin is tiny): cin VPU broadcast-FMAs, f32 accumulation.
    h1 = None
    for c in range(cin):                                    # static unroll
        term = w1t_ref[:, c:c + 1] * x[c:c + 1, :]          # (ndf,1)*(1,tm)
        h1 = term if h1 is None else h1 + term
    h1 = _leaky_relu(h1 + b1_ref[...])                      # (ndf, tm) f32
    # Second 1x1 conv: the only MXU matmul (K=ndf), bf16 operands, f32 acc.
    h2 = jnp.dot(w2t_ref[...], h1.astype(jnp.bfloat16),
                 preferred_element_type=jnp.float32)        # (c2, tm) f32
    return h2


# ----------------------------------------------------------------------------
# Pallas kernels
# ----------------------------------------------------------------------------

def _stats_kernel(x_ref, w1t_ref, b1_ref, w2t_ref, sum_ref, sq_ref, *,
                  tm, m_total):
    """Pass 1: per-tile BatchNorm partial statistics of h2 (sum, sumsq)."""
    h2 = _hidden_t(x_ref, w1t_ref, b1_ref, w2t_ref)         # (c2, tm) f32

    def write(h):
        sum_ref[...] = jnp.sum(h, axis=1, keepdims=True)[None]      # (1,c2,1)
        sq_ref[...] = jnp.sum(h * h, axis=1, keepdims=True)[None]   # (1,c2,1)

    if m_total % tm == 0:
        # No padded pixels anywhere: no masking code at all.
        write(h2)
    else:
        i = pl.program_id(0)
        last = pl.num_programs(0) - 1

        @pl.when(i != last)
        def _():
            write(h2)

        @pl.when(i == last)
        def _():
            # Only the last tile holds padded columns; mask them out of the
            # batch statistics.
            col = jax.lax.broadcasted_iota(jnp.int32, h2.shape, 1)
            valid = (i * tm + col) < m_total
            write(jnp.where(valid, h2, 0.0))


def _fwd_kernel(x_ref, w1t_ref, b1_ref, w2t_ref, scale_ref, shift_ref, w3_ref,
                o_ref):
    """Pass 2: recompute h2, folded BN + LeakyReLU, 1-channel projection."""
    h2 = _hidden_t(x_ref, w1t_ref, b1_ref, w2t_ref)          # (c2, tm) f32
    h2 = _leaky_relu(h2 * scale_ref[...] + shift_ref[...])   # folded BN (f32)
    # Final 1x1 conv (Cout=1): VPU multiply + sublane reduce -> lane-dense row.
    out_row = jnp.sum(h2 * w3_ref[...], axis=0, keepdims=True)   # (1, tm)
    o_ref[...] = out_row[None].astype(o_ref.dtype)               # (1, 1, tm)


# ----------------------------------------------------------------------------
# Forward pass wrapper
# ----------------------------------------------------------------------------

def _choose_tile(m_total, tm_cap):
    m_unit = 256                      # lane/sublane-friendly tile unit
    tm_cap = max(m_unit, _round_up(tm_cap, m_unit))
    m_ceil = _round_up(m_total, m_unit)
    if m_ceil >= 2 * m_unit:
        # At least 2 tiles so both v7x TensorCores get work on the
        # "parallel" grid axis; cap the tile to bound per-step VMEM.
        tm = min(tm_cap, _round_up((m_ceil + 1) // 2, m_unit))
    else:
        tm = m_ceil
    m_pad = _round_up(m_total, tm)
    return tm, m_pad, m_pad // tm


def pixel_discriminator_forward(params, x_nchw, *, tm_cap=4096):
    w1, b1, w2 = params["w1"], params["b1"], params["w2"]
    gamma, beta, w3 = params["gamma"], params["beta"], params["w3"]

    B, cin, H, W = x_nchw.shape
    ndf = w1.shape[1]
    c2 = w2.shape[1]
    m_total = B * H * W

    # Channels-first pixel matrix: (Cin, B*H*W) -- pixels live on the lane axis
    # so every hidden tensor and the final 1-channel output are lane-dense.
    xT = jnp.transpose(x_nchw, (1, 0, 2, 3)).reshape(cin, m_total)
    xT = xT.astype(jnp.float32)

    tm, m_pad, n_tiles = _choose_tile(m_total, tm_cap)
    if m_pad != m_total:
        xT = jnp.pad(xT, ((0, 0), (0, m_pad - m_total)))

    # Weight layouts for the transposed orientation. Only the ndf->2*ndf
    # matmul goes through the MXU (bf16); everything else stays f32.
    w1t = jnp.transpose(w1).astype(jnp.float32)             # (ndf, cin)
    b1c = b1.reshape(ndf, 1).astype(jnp.float32)            # (ndf, 1)
    w2t = jnp.transpose(w2).astype(jnp.bfloat16)            # (c2, ndf)
    w3c = w3.reshape(c2, 1).astype(jnp.float32)             # (c2, 1)

    x_spec = pl.BlockSpec((cin, tm), lambda i: (0, i))
    w1_spec = pl.BlockSpec((ndf, cin), lambda i: (0, 0))
    b1_spec = pl.BlockSpec((ndf, 1), lambda i: (0, 0))
    w2_spec = pl.BlockSpec((c2, ndf), lambda i: (0, 0))
    col_spec = pl.BlockSpec((c2, 1), lambda i: (0, 0))

    # ---- pass 1: per-tile BatchNorm partial statistics ----------------------
    sums, sqs = pl.pallas_call(
        functools.partial(_stats_kernel, tm=tm, m_total=m_total),
        out_shape=(jax.ShapeDtypeStruct((n_tiles, c2, 1), jnp.float32),
                   jax.ShapeDtypeStruct((n_tiles, c2, 1), jnp.float32)),
        grid=(n_tiles,),
        in_specs=[x_spec, w1_spec, b1_spec, w2_spec],
        out_specs=(pl.BlockSpec((1, c2, 1), lambda i: (i, 0, 0)),
                   pl.BlockSpec((1, c2, 1), lambda i: (i, 0, 0))),
        compiler_params=pltpu.CompilerParams(
            dimension_semantics=("parallel",)),
    )(xT, w1t, b1c, w2t)

    # ---- tiny reduction + BN fold (plain JAX, (C2,)-sized) -------------------
    n = jnp.float32(m_total)
    mean = jnp.sum(sums[:, :, 0], axis=0) / n
    var = jnp.maximum(jnp.sum(sqs[:, :, 0], axis=0) / n - mean * mean, 0.0)
    inv_std = jax.lax.rsqrt(var + BN_EPS)
    scale = (gamma * inv_std).reshape(c2, 1).astype(jnp.float32)
    shift = (beta - mean * gamma * inv_std).reshape(c2, 1).astype(jnp.float32)

    # ---- pass 2: full fused forward, lane-dense output ----------------------
    out = pl.pallas_call(
        _fwd_kernel,
        out_shape=jax.ShapeDtypeStruct((n_tiles, 1, tm), jnp.float32),
        grid=(n_tiles,),
        in_specs=[x_spec, w1_spec, b1_spec, w2_spec, col_spec, col_spec,
                  col_spec],
        out_specs=pl.BlockSpec((1, 1, tm), lambda i: (i, 0, 0)),
        compiler_params=pltpu.CompilerParams(
            dimension_semantics=("parallel",)),
    )(xT, w1t, b1c, w2t, scale, shift, w3c)

    out = out.reshape(m_pad)[:m_total].reshape(B, H, W)
    return out[:, None, :, :]                                # (B, 1, H, W)


# ----------------------------------------------------------------------------
# Pure-JAX f32 reference (loose self-check; bf16 MXU tolerance)
# ----------------------------------------------------------------------------

def reference_forward(params, x_nchw):
    w1, b1, w2 = params["w1"], params["b1"], params["w2"]
    gamma, beta, w3 = params["gamma"], params["beta"], params["w3"]
    x = jnp.transpose(x_nchw, (0, 2, 3, 1))                  # (B,H,W,Cin)
    h1 = _leaky_relu(jnp.einsum("bhwc,cd->bhwd", x, w1) + b1)
    h2 = jnp.einsum("bhwc,cd->bhwd", h1, w2)
    mean = jnp.mean(h2, axis=(0, 1, 2))
    var = jnp.mean((h2 - mean) ** 2, axis=(0, 1, 2))         # biased
    h2 = (h2 - mean) * jax.lax.rsqrt(var + BN_EPS) * gamma + beta
    h2 = _leaky_relu(h2)
    out = jnp.einsum("bhwc,co->bhwo", h2, w3)
    return jnp.transpose(out, (0, 3, 1, 2))


# ----------------------------------------------------------------------------
# Deterministic parameter init (exact PyTorch init scheme irrelevant here;
# only determinism and nonzero weights/bias matter for exercising the kernels)
# ----------------------------------------------------------------------------

def init_params(key, input_nc, ndf):
    k1, k2, k3, k4 = jax.random.split(key, 4)
    w1 = jax.random.normal(k1, (input_nc, ndf), jnp.float32) / np.sqrt(input_nc)
    b1 = 0.1 * jax.random.normal(k2, (ndf,), jnp.float32)
    w2 = jax.random.normal(k3, (ndf, 2 * ndf), jnp.float32) / np.sqrt(ndf)
    gamma = jnp.ones((2 * ndf,), jnp.float32)    # BatchNorm2d affine defaults
    beta = jnp.zeros((2 * ndf,), jnp.float32)
    w3 = jax.random.normal(k4, (2 * ndf, 1), jnp.float32) / np.sqrt(2 * ndf)
    return dict(w1=w1, b1=b1, w2=w2, gamma=gamma, beta=beta, w3=w3)


# ----------------------------------------------------------------------------
# Main
# ----------------------------------------------------------------------------

if __name__ == "__main__":
    input_nc, ndf = 4, 64          # -> 2*ndf = 128: lane-friendly hidden width
    B, H, W = 2, 16, 16

    key = jax.random.PRNGKey(0)
    pkey, xkey = jax.random.split(key)
    params = init_params(pkey, input_nc, ndf)
    x = jax.random.normal(xkey, (B, input_nc, H, W), jnp.float32)

    fwd = jax.jit(pixel_discriminator_forward)
    out = jax.block_until_ready(fwd(params, x))

    assert out.shape == (B, 1, H, W), out.shape
    assert bool(jnp.all(jnp.isfinite(out)))

    ref = reference_forward(params, x)
    err = float(jnp.max(jnp.abs(out - ref)))
    ref_scale = float(jnp.max(jnp.abs(ref))) + 1e-6
    assert err <= 0.05 * ref_scale + 1e-3, (err, ref_scale)

    print("KERNEL_OK")
</pallas_src>

<mosaic_0001>
module attributes {stable_mosaic.version = 11 : i64} {
  func.func @_stats_kernel(%arg0: i32, %arg1: memref<4x256xf32, #tpu.memory_space<vmem>>, %arg2: memref<64x4xf32, #tpu.memory_space<vmem>>, %arg3: memref<64x1xf32, #tpu.memory_space<vmem>>, %arg4: memref<128x64xbf16, #tpu.memory_space<vmem>>, %arg5: memref<1x128x1xf32, #tpu.memory_space<vmem>>, %arg6: memref<1x128x1xf32, #tpu.memory_space<vmem>>) attributes {dimension_semantics = [#tpu.dimension_semantics<parallel>], iteration_bounds = array<i64: 2>, scalar_prefetch = 0 : i64, scratch_operands = 0 : i64, tpu.core_type = #tpu.core_type<tc>, window_params = [{transform_indices = @transform_0, window_bounds = array<i64: 4, 256>}, {pipeline_mode = #tpu.pipeline_mode<synchronous>, transform_indices = @transform_1, window_bounds = array<i64: 64, 4>}, {pipeline_mode = #tpu.pipeline_mode<synchronous>, transform_indices = @transform_2, window_bounds = array<i64: 64, 1>}, {pipeline_mode = #tpu.pipeline_mode<synchronous>, transform_indices = @transform_3, window_bounds = array<i64: 128, 64>}, {transform_indices = @transform_4, window_bounds = array<i64: 1, 128, 1>}, {transform_indices = @transform_5, window_bounds = array<i64: 1, 128, 1>}]} {
    %c0 = arith.constant 0 : index
    %c0_0 = arith.constant 0 : index
    %0 = vector.load %arg1[%c0, %c0_0] : memref<4x256xf32, #tpu.memory_space<vmem>>, vector<4x256xf32>
    %c0_1 = arith.constant 0 : index
    %c0_2 = arith.constant 0 : index
    %1 = vector.load %arg2[%c0_1, %c0_2] : memref<64x4xf32, #tpu.memory_space<vmem>>, vector<64x1xf32>
    %2 = vector.extract_strided_slice %0 {offsets = [0, 0], sizes = [1, 256], strides = [1, 1]} : vector<4x256xf32> to vector<1x256xf32>
    %3 = vector.broadcast %1 : vector<64x1xf32> to vector<64x256xf32>
    %4 = vector.broadcast %2 : vector<1x256xf32> to vector<64x256xf32>
    %5 = arith.mulf %3, %4 : vector<64x256xf32>
    %c0_3 = arith.constant 0 : index
    %c1 = arith.constant 1 : index
    %6 = vector.load %arg2[%c0_3, %c1] : memref<64x4xf32, #tpu.memory_space<vmem>>, vector<64x1xf32>
    %7 = vector.extract_strided_slice %0 {offsets = [1, 0], sizes = [1, 256], strides = [1, 1]} : vector<4x256xf32> to vector<1x256xf32>
    %8 = vector.broadcast %6 : vector<64x1xf32> to vector<64x256xf32>
    %9 = vector.broadcast %7 : vector<1x256xf32> to vector<64x256xf32>
    %10 = arith.mulf %8, %9 : vector<64x256xf32>
    %11 = arith.addf %5, %10 : vector<64x256xf32>
    %c0_4 = arith.constant 0 : index
    %c2 = arith.constant 2 : index
    %12 = vector.load %arg2[%c0_4, %c2] : memref<64x4xf32, #tpu.memory_space<vmem>>, vector<64x1xf32>
    %13 = vector.extract_strided_slice %0 {offsets = [2, 0], sizes = [1, 256], strides = [1, 1]} : vector<4x256xf32> to vector<1x256xf32>
    %14 = vector.broadcast %12 : vector<64x1xf32> to vector<64x256xf32>
    %15 = vector.broadcast %13 : vector<1x256xf32> to vector<64x256xf32>
    %16 = arith.mulf %14, %15 : vector<64x256xf32>
    %17 = arith.addf %11, %16 : vector<64x256xf32>
    %c0_5 = arith.constant 0 : index
    %c3 = arith.constant 3 : index
    %18 = vector.load %arg2[%c0_5, %c3] : memref<64x4xf32, #tpu.memory_space<vmem>>, vector<64x1xf32>
    %19 = vector.extract_strided_slice %0 {offsets = [3, 0], sizes = [1, 256], strides = [1, 1]} : vector<4x256xf32> to vector<1x256xf32>
    %20 = vector.broadcast %18 : vector<64x1xf32> to vector<64x256xf32>
    %21 = vector.broadcast %19 : vector<1x256xf32> to vector<64x256xf32>
    %22 = arith.mulf %20, %21 : vector<64x256xf32>
    %23 = arith.addf %17, %22 : vector<64x256xf32>
    %c0_6 = arith.constant 0 : index
    %c0_7 = arith.constant 0 : index
    %24 = vector.load %arg3[%c0_6, %c0_7] : memref<64x1xf32, #tpu.memory_space<vmem>>, vector<64x1xf32>
    %25 = vector.broadcast %24 : vector<64x1xf32> to vector<64x256xf32>
    %26 = arith.addf %23, %25 : vector<64x256xf32>
    %cst = arith.constant 0.000000e+00 : f32
    %27 = vector.broadcast %cst : f32 to vector<64x256xf32>
    %28 = arith.cmpf oge, %26, %27 : vector<64x256xf32>
    %cst_8 = arith.constant 2.000000e-01 : f32
    %29 = vector.broadcast %cst_8 : f32 to vector<64x256xf32>
    %30 = arith.mulf %29, %26 : vector<64x256xf32>
    %31 = arith.select %28, %26, %30 : vector<64x256xi1>, vector<64x256xf32>
    %c0_9 = arith.constant 0 : index
    %c0_10 = arith.constant 0 : index
    %32 = vector.load %arg4[%c0_9, %c0_10] : memref<128x64xbf16, #tpu.memory_space<vmem>>, vector<128x64xbf16>
    %33 = arith.truncf %31 : vector<64x256xf32> to vector<64x256xbf16>
    %cst_11 = arith.constant dense<0.000000e+00> : vector<128x256xf32>
    %34 = tpu.matmul %32, %33, %cst_11 {dimension_numbers = #tpu.dot_dimension_numbers<[1], [0], [0], [1], [0, 0, 1, 1], [], []>} : vector<128x64xbf16>, vector<64x256xbf16>, vector<128x256xf32> -> vector<128x256xf32>
    %cst_12 = arith.constant dense<0.000000e+00> : vector<128xf32>
    %35 = vector.multi_reduction <add>, %34, %cst_12 [1] : vector<128x256xf32> to vector<128xf32>
    %36 = vector.shape_cast %35 : vector<128xf32> to vector<128x1xf32>
    %37 = vector.shape_cast %36 : vector<128x1xf32> to vector<1x128x1xf32>
    %c0_13 = arith.constant 0 : index
    %c0_14 = arith.constant 0 : index
    %c0_15 = arith.constant 0 : index
    %38 = vector.load %arg5[%c0_13, %c0_14, %c0_15] : memref<1x128x1xf32, #tpu.memory_space<vmem>>, vector<1x128x1xf32>
    tpu.vector_store %arg5[%c0_13, %c0_14, %c0_15], %37 {strides = array<i32>} : memref<1x128x1xf32, #tpu.memory_space<vmem>>, vector<1x128x1xf32>,
    %39 = arith.mulf %34, %34 : vector<128x256xf32>
    %cst_16 = arith.constant dense<0.000000e+00> : vector<128xf32>
    %40 = vector.multi_reduction <add>, %39, %cst_16 [1] : vector<128x256xf32> to vector<128xf32>
    %41 = vector.shape_cast %40 : vector<128xf32> to vector<128x1xf32>
    %42 = vector.shape_cast %41 : vector<128x1xf32> to vector<1x128x1xf32>
    %c0_17 = arith.constant 0 : index
    %c0_18 = arith.constant 0 : index
    %c0_19 = arith.constant 0 : index
    %43 = vector.load %arg6[%c0_17, %c0_18, %c0_19] : memref<1x128x1xf32, #tpu.memory_space<vmem>>, vector<1x128x1xf32>
    tpu.vector_store %arg6[%c0_17, %c0_18, %c0_19], %42 {strides = array<i32>} : memref<1x128x1xf32, #tpu.memory_space<vmem>>, vector<1x128x1xf32>,
    return
  }
  func.func @transform_0(%arg0: i32) -> (i32, i32) {
    %c0_i32 = arith.constant 0 : i32
    %c0_i32_0 = arith.constant 0 : i32
    return %c0_i32, %arg0 : i32, i32
  }
  func.func @transform_1(%arg0: i32) -> (i32, i32) {
    %c0_i32 = arith.constant 0 : i32
    %c0_i32_0 = arith.constant 0 : i32
    %c0_i32_1 = arith.constant 0 : i32
    return %c0_i32, %c0_i32_0 : i32, i32
  }
  func.func @transform_2(%arg0: i32) -> (i32, i32) {
    %c0_i32 = arith.constant 0 : i32
    %c0_i32_0 = arith.constant 0 : i32
    %c0_i32_1 = arith.constant 0 : i32
    return %c0_i32, %c0_i32_0 : i32, i32
  }
  func.func @transform_3(%arg0: i32) -> (i32, i32) {
    %c0_i32 = arith.constant 0 : i32
    %c0_i32_0 = arith.constant 0 : i32
    %c0_i32_1 = arith.constant 0 : i32
    return %c0_i32, %c0_i32_0 : i32, i32
  }
  func.func @transform_4(%arg0: i32) -> (i32, i32, i32) {
    %c0_i32 = arith.constant 0 : i32
    %c0_i32_0 = arith.constant 0 : i32
    %c0_i32_1 = arith.constant 0 : i32
    return %arg0, %c0_i32, %c0_i32_0 : i32, i32, i32
  }
  func.func @transform_5(%arg0: i32) -> (i32, i32, i32) {
    %c0_i32 = arith.constant 0 : i32
    %c0_i32_0 = arith.constant 0 : i32
    %c0_i32_1 = arith.constant 0 : i32
    return %arg0, %c0_i32, %c0_i32_0 : i32, i32, i32
  }
}

module attributes {stable_mosaic.version = 11 : i64} {
  func.func @_fwd_kernel(%arg0: i32, %arg1: memref<4x256xf32, #tpu.memory_space<vmem>>, %arg2: memref<64x4xf32, #tpu.memory_space<vmem>>, %arg3: memref<64x1xf32, #tpu.memory_space<vmem>>, %arg4: memref<128x64xbf16, #tpu.memory_space<vmem>>, %arg5: memref<128x1xf32, #tpu.memory_space<vmem>>, %arg6: memref<128x1xf32, #tpu.memory_space<vmem>>, %arg7: memref<128x1xf32, #tpu.memory_space<vmem>>, %arg8: memref<1x1x256xf32, #tpu.memory_space<vmem>>) attributes {dimension_semantics = [#tpu.dimension_semantics<parallel>], iteration_bounds = array<i64: 2>, scalar_prefetch = 0 : i64, scratch_operands = 0 : i64, tpu.core_type = #tpu.core_type<tc>, window_params = [{transform_indices = @transform_0, window_bounds = array<i64: 4, 256>}, {pipeline_mode = #tpu.pipeline_mode<synchronous>, transform_indices = @transform_1, window_bounds = array<i64: 64, 4>}, {pipeline_mode = #tpu.pipeline_mode<synchronous>, transform_indices = @transform_2, window_bounds = array<i64: 64, 1>}, {pipeline_mode = #tpu.pipeline_mode<synchronous>, transform_indices = @transform_3, window_bounds = array<i64: 128, 64>}, {pipeline_mode = #tpu.pipeline_mode<synchronous>, transform_indices = @transform_4, window_bounds = array<i64: 128, 1>}, {pipeline_mode = #tpu.pipeline_mode<synchronous>, transform_indices = @transform_5, window_bounds = array<i64: 128, 1>}, {pipeline_mode = #tpu.pipeline_mode<synchronous>, transform_indices = @transform_6, window_bounds = array<i64: 128, 1>}, {transform_indices = @transform_7, window_bounds = array<i64: 1, 1, 256>}]} {
    %c0 = arith.constant 0 : index
    %c0_0 = arith.constant 0 : index
    %0 = vector.load %arg1[%c0, %c0_0] : memref<4x256xf32, #tpu.memory_space<vmem>>, vector<4x256xf32>
    %c0_1 = arith.constant 0 : index
    %c0_2 = arith.constant 0 : index
    %1 = vector.load %arg2[%c0_1, %c0_2] : memref<64x4xf32, #tpu.memory_space<vmem>>, vector<64x1xf32>
    %2 = vector.extract_strided_slice %0 {offsets = [0, 0], sizes = [1, 256], strides = [1, 1]} : vector<4x256xf32> to vector<1x256xf32>
    %3 = vector.broadcast %1 : vector<64x1xf32> to vector<64x256xf32>
    %4 = vector.broadcast %2 : vector<1x256xf32> to vector<64x256xf32>
    %5 = arith.mulf %3, %4 : vector<64x256xf32>
    %c0_3 = arith.constant 0 : index
    %c1 = arith.constant 1 : index
    %6 = vector.load %arg2[%c0_3, %c1] : memref<64x4xf32, #tpu.memory_space<vmem>>, vector<64x1xf32>
    %7 = vector.extract_strided_slice %0 {offsets = [1, 0], sizes = [1, 256], strides = [1, 1]} : vector<4x256xf32> to vector<1x256xf32>
    %8 = vector.broadcast %6 : vector<64x1xf32> to vector<64x256xf32>
    %9 = vector.broadcast %7 : vector<1x256xf32> to vector<64x256xf32>
    %10 = arith.mulf %8, %9 : vector<64x256xf32>
    %11 = arith.addf %5, %10 : vector<64x256xf32>
    %c0_4 = arith.constant 0 : index
    %c2 = arith.constant 2 : index
    %12 = vector.load %arg2[%c0_4, %c2] : memref<64x4xf32, #tpu.memory_space<vmem>>, vector<64x1xf32>
    %13 = vector.extract_strided_slice %0 {offsets = [2, 0], sizes = [1, 256], strides = [1, 1]} : vector<4x256xf32> to vector<1x256xf32>
    %14 = vector.broadcast %12 : vector<64x1xf32> to vector<64x256xf32>
    %15 = vector.broadcast %13 : vector<1x256xf32> to vector<64x256xf32>
    %16 = arith.mulf %14, %15 : vector<64x256xf32>
    %17 = arith.addf %11, %16 : vector<64x256xf32>
    %c0_5 = arith.constant 0 : index
    %c3 = arith.constant 3 : index
    %18 = vector.load %arg2[%c0_5, %c3] : memref<64x4xf32, #tpu.memory_space<vmem>>, vector<64x1xf32>
    %19 = vector.extract_strided_slice %0 {offsets = [3, 0], sizes = [1, 256], strides = [1, 1]} : vector<4x256xf32> to vector<1x256xf32>
    %20 = vector.broadcast %18 : vector<64x1xf32> to vector<64x256xf32>
    %21 = vector.broadcast %19 : vector<1x256xf32> to vector<64x256xf32>
    %22 = arith.mulf %20, %21 : vector<64x256xf32>
    %23 = arith.addf %17, %22 : vector<64x256xf32>
    %c0_6 = arith.constant 0 : index
    %c0_7 = arith.constant 0 : index
    %24 = vector.load %arg3[%c0_6, %c0_7] : memref<64x1xf32, #tpu.memory_space<vmem>>, vector<64x1xf32>
    %25 = vector.broadcast %24 : vector<64x1xf32> to vector<64x256xf32>
    %26 = arith.addf %23, %25 : vector<64x256xf32>
    %cst = arith.constant 0.000000e+00 : f32
    %27 = vector.broadcast %cst : f32 to vector<64x256xf32>
    %28 = arith.cmpf oge, %26, %27 : vector<64x256xf32>
    %cst_8 = arith.constant 2.000000e-01 : f32
    %29 = vector.broadcast %cst_8 : f32 to vector<64x256xf32>
    %30 = arith.mulf %29, %26 : vector<64x256xf32>
    %31 = arith.select %28, %26, %30 : vector<64x256xi1>, vector<64x256xf32>
    %c0_9 = arith.constant 0 : index
    %c0_10 = arith.constant 0 : index
    %32 = vector.load %arg4[%c0_9, %c0_10] : memref<128x64xbf16, #tpu.memory_space<vmem>>, vector<128x64xbf16>
    %33 = arith.truncf %31 : vector<64x256xf32> to vector<64x256xbf16>
    %cst_11 = arith.constant dense<0.000000e+00> : vector<128x256xf32>
    %34 = tpu.matmul %32, %33, %cst_11 {dimension_numbers = #tpu.dot_dimension_numbers<[1], [0], [0], [1], [0, 0, 1, 1], [], []>} : vector<128x64xbf16>, vector<64x256xbf16>, vector<128x256xf32> -> vector<128x256xf32>
    %c0_12 = arith.constant 0 : index
    %c0_13 = arith.constant 0 : index
    %35 = vector.load %arg5[%c0_12, %c0_13] : memref<128x1xf32, #tpu.memory_space<vmem>>, vector<128x1xf32>
    %36 = vector.broadcast %35 : vector<128x1xf32> to vector<128x256xf32>
    %37 = arith.mulf %34, %36 : vector<128x256xf32>
    %c0_14 = arith.constant 0 : index
    %c0_15 = arith.constant 0 : index
    %38 = vector.load %arg6[%c0_14, %c0_15] : memref<128x1xf32, #tpu.memory_space<vmem>>, vector<128x1xf32>
    %39 = vector.broadcast %38 : vector<128x1xf32> to vector<128x256xf32>
    %40 = arith.addf %37, %39 : vector<128x256xf32>
    %cst_16 = arith.constant 0.000000e+00 : f32
    %41 = vector.broadcast %cst_16 : f32 to vector<128x256xf32>
    %42 = arith.cmpf oge, %40, %41 : vector<128x256xf32>
    %cst_17 = arith.constant 2.000000e-01 : f32
    %43 = vector.broadcast %cst_17 : f32 to vector<128x256xf32>
    %44 = arith.mulf %43, %40 : vector<128x256xf32>
    %45 = arith.select %42, %40, %44 : vector<128x256xi1>, vector<128x256xf32>
    %c0_18 = arith.constant 0 : index
    %c0_19 = arith.constant 0 : index
    %46 = vector.load %arg7[%c0_18, %c0_19] : memref<128x1xf32, #tpu.memory_space<vmem>>, vector<128x1xf32>
    %47 = vector.broadcast %46 : vector<128x1xf32> to vector<128x256xf32>
    %48 = arith.mulf %45, %47 : vector<128x256xf32>
    %cst_20 = arith.constant dense<0.000000e+00> : vector<256xf32>
    %49 = vector.multi_reduction <add>, %48, %cst_20 [0] : vector<128x256xf32> to vector<256xf32>
    %50 = vector.shape_cast %49 : vector<256xf32> to vector<1x256xf32>
    %51 = vector.shape_cast %50 : vector<1x256xf32> to vector<1x1x256xf32>
    %c0_21 = arith.constant 0 : index
    %c0_22 = arith.constant 0 : index
    %c0_23 = arith.constant 0 : index
    %52 = vector.load %arg8[%c0_21, %c0_22, %c0_23] : memref<1x1x256xf32, #tpu.memory_space<vmem>>, vector<1x1x256xf32>
    tpu.vector_store %arg8[%c0_21, %c0_22, %c0_23], %51 {strides = array<i32>} : memref<1x1x256xf32, #tpu.memory_space<vmem>>, vector<1x1x256xf32>,
    return
  }
  func.func @transform_0(%arg0: i32) -> (i32, i32) {
    %c0_i32 = arith.constant 0 : i32
    %c0_i32_0 = arith.constant 0 : i32
    return %c0_i32, %arg0 : i32, i32
  }
  func.func @transform_1(%arg0: i32) -> (i32, i32) {
    %c0_i32 = arith.constant 0 : i32
    %c0_i32_0 = arith.constant 0 : i32
    %c0_i32_1 = arith.constant 0 : i32
    return %c0_i32, %c0_i32_0 : i32, i32
  }
  func.func @transform_2(%arg0: i32) -> (i32, i32) {
    %c0_i32 = arith.constant 0 : i32
    %c0_i32_0 = arith.constant 0 : i32
    %c0_i32_1 = arith.constant 0 : i32
    return %c0_i32, %c0_i32_0 : i32, i32
  }
  func.func @transform_3(%arg0: i32) -> (i32, i32) {
    %c0_i32 = arith.constant 0 : i32
    %c0_i32_0 = arith.constant 0 : i32
    %c0_i32_1 = arith.constant 0 : i32
    return %c0_i32, %c0_i32_0 : i32, i32
  }
  func.func @transform_4(%arg0: i32) -> (i32, i32) {
    %c0_i32 = arith.constant 0 : i32
    %c0_i32_0 = arith.constant 0 : i32
    %c0_i32_1 = arith.constant 0 : i32
    return %c0_i32, %c0_i32_0 : i32, i32
  }
  func.func @transform_5(%arg0: i32) -> (i32, i32) {
    %c0_i32 = arith.constant 0 : i32
    %c0_i32_0 = arith.constant 0 : i32
    %c0_i32_1 = arith.constant 0 : i32
    return %c0_i32, %c0_i32_0 : i32, i32
  }
  func.func @transform_6(%arg0: i32) -> (i32, i32) {
    %c0_i32 = arith.constant 0 : i32
    %c0_i32_0 = arith.constant 0 : i32
    %c0_i32_1 = arith.constant 0 : i32
    return %c0_i32, %c0_i32_0 : i32, i32
  }
  func.func @transform_7(%arg0: i32) -> (i32, i32, i32) {
    %c0_i32 = arith.constant 0 : i32
    %c0_i32_0 = arith.constant 0 : i32
    %c0_i32_1 = arith.constant 0 : i32
    return %arg0, %c0_i32, %c0_i32_0 : i32, i32, i32
  }
}

</mosaic_0001>

<bundles_post_ra>
// kernel: pixel_discriminator_forward.2
= control target key start
LH: loop header
LB: loop body
LE: loop exit
PB: predicated region body
PF: predicated region fallthrough
CT: control target
= control target key end

     0   :  { %s1235_s18 = smov 0   ;;  %s1608_s0 = inlined_call_operand.vmem [shape: f32[4,512], index: 0, kind: input, shape index: {}]   ;;  %s1609_s1 = inlined_call_operand.vmem [shape: f32[64,4], index: 1, kind: input, shape index: {}]   ;;  %s1610_s2 = inlined_call_operand.vmem [shape: f32[64,1], index: 2, kind: input, shape index: {}]   ;;  %s1611_s3 = inlined_call_operand.vmem [shape: bf16[128,64], index: 3, kind: input, shape index: {}]   ;;  %s1612_s4 = inlined_call_operand.vmem [shape: f32[2,128,1], index: 4, kind: output, shape index: {0}]   ;;  %s1613_s5 = inlined_call_operand.vmem [shape: f32[2,128,1], index: 5, kind: output, shape index: {1}]  }
   0x1 LB: > { %s1241_s19 = sadd.s32 4294967295, %s1199_s18   ;;  %p1075_p0 = scmp.ge.s32.totalorder %s1199_s18, 1  ;;  %s1199_s18 = sphi %s1235_s18, %s16_s18  }
   0x2   : > { %p191_p1 = scmp.lt.s32.totalorder %s1199_s18, 3 }
   0x4   : > { %p192_p2 = pnand %p1075_p0, %p191_p1 }
   0x5   : > { %s1076_s29 = sshll.u32 (!%p192_p2), %s1241_s19, 1  ;;  %p230_p4 = scmp.lt.s32.totalorder (!%p192_p2), %s1241_s19, 1 }
   0x6   : > { %195 = sbr.rel (%p192_p2) target bundleno = 596 (0x254), region = 36  ;;  %p225_p3 = scmp.lt.s32.totalorder (!%p192_p2), %s1076_s29, 3 }
   0xb   : > { %v246_v0 = vld [vmem:[%s1609_s1 + $0x20] sm:$0xff]  ;;  %v1251_v1 = vld [vmem:[%s1609_s1 + $0x10] sm:$0xff]  ;;  %v1201_v3 = vmov 0   ;;  %v247_v4 = vld [vmem:[%s1609_s1 + $0x28] sm:$0xff]  ;;  %v1202_v9 = vmov 1   ;;  %v1203_v10 = vmov 2  }
   0xc   : > { %v1256_v2 = vld [vmem:[%s1609_s1] sm:$0xff]  ;;  %1164 = vset.pattern.permute.xlu2 %v1201_v3  ;;  %1163 = vset.pattern.permute.xlu1 %v1201_v3  ;;  %v245_v5 = vld [vmem:[%s1609_s1 + $0x18] sm:$0xff]  ;;  %v1272_v6 = vld [vmem:[%s1609_s1 + $0x8] sm:$0xff]  ;;  %v1204_v11 = vmov 3   ;;  %s1615_s29 = smov (!%p225_p3, %s1076_s29), 3  ;;  %s1617_s19 = smov (!%p230_p4, %s1241_s19), 1 }
   0xd   : > { %1162 = vset.pattern.permute.xlu0 %v1201_v3  ;;  %272 = vperm.xlu2 %1164, %v246_v0   ;;  %v249_v7 = vld [vmem:[%s1609_s1 + $0x38] sm:$0xff]  ;;  %v248_v8 = vld [vmem:[%s1609_s1 + $0x30] sm:$0xff]  ;;  %v527_v16 = vld [vmem:[%s1610_s2 + $0x20] sm:$0xff]  ;;  %s1077_s30 = sshll.u32 %s1615_s29, 2  ;;  %s1132_s27 = sshll.u32 %s1617_s19, 7 }
   0xe   : > { %262 = vperm.xlu1 %1163, %v1251_v1   ;;  %252 = vperm.xlu0 %1162, %v1256_v2   ;;  %v529_v12 = vld [vmem:[%s1610_s2 + $0x30] sm:$0xff]  ;;  %v530_v13 = vld [vmem:[%s1610_s2 + $0x38] sm:$0xff]  ;;  %v528_v17 = vld [vmem:[%s1610_s2 + $0x28] sm:$0xff]  ;;  %s228_s8 = scalar_lea.vmem %s1608_s0, %s1077_s30  ;;  %s1534_s30 = scalar_lea.vmem %s1612_s4, %s1132_s27 }
   0xf   : > { %v526_v14 = vld [vmem:[%s1610_s2 + $0x18] sm:$0xff]  ;;  %v525_v22 = vld [vmem:[%s1610_s2 + $0x10] sm:$0xff]  ;;  %v523_v25 = vld [vmem:[%s1610_s2] sm:$0xff] }
  0x10   : > { %v524_v26 = vld [vmem:[%s1610_s2 + $0x8] sm:$0xff]  ;;  %v241_v39 = vld [vmem:[%s228_s8] sm:$0xff]  ;;  %s1541_s8 = scalar_lea.vmem %s1613_s5, %s1132_s27 }
  0x11   : > { %v345_v40 = vperm.slane %v241_v39, 1  ;;  %v346_v41 = vperm.slane %v241_v39, 5  ;;  %v291_v43 = vperm.slane %v241_v39, 0  ;;  %v292_v44 = vperm.slane %v241_v39, 4 }
  0x12   : > { %v415_v46 = vperm.slane %v241_v39, 2  ;;  %v416_v47 = vperm.slane %v241_v39, 6  ;;  %v485_v50 = vperm.slane %v241_v39, 3  ;;  %v486_v51 = vperm.slane %v241_v39, 7 }
  0x13   : > { %v1353_v48 = vperm.slane %v345_v40, 1  ;;  %v1355_v49 = vperm.slane %v346_v41, 1  ;;  %v1357_v52 = vperm.slane %v291_v43, 0  ;;  %v1359_v53 = vperm.slane %v292_v44, 0 }
  0x14   : > { %v1363_v55 = vperm.slane %v415_v46, 2  ;;  %v1365_v56 = vperm.slane %v416_v47, 2  ;;  %v1371_v61 = vperm.slane %v485_v50, 3  ;;  %v1373_v62 = vperm.slane %v486_v51, 3 }
  0x15   : > { %277 = vperm.xlu2 %1164, %v247_v4  }
  0x16   : > { %267 = vperm.xlu1 %1163, %v245_v5   ;;  %257 = vperm.xlu0 %1162, %v1272_v6  }
  0x1d   : > { %1165 = vset.pattern.permute.xlu2 %v1202_v9 }
  0x1e   : > { %287 = vperm.xlu1 %1163, %v249_v7   ;;  %282 = vperm.xlu0 %1162, %v248_v8  }
  0x1f   : > { %338 = vperm.xlu2 %1165, %v248_v8  }
  0x26   : > { %1167 = vset.pattern.permute.xlu1 %v1203_v10  ;;  %1166 = vset.pattern.permute.xlu0 %v1202_v9 }
  0x27   : > { %1168 = vset.pattern.permute.xlu2 %v1203_v10  ;;  %408 = vperm.xlu1 %1167, %v248_v8  }
  0x28   : > { %342 = vperm.xlu0 %1166, %v249_v7   ;;  %412 = vperm.xlu2 %1168, %v249_v7  }
  0x2f   : > { %1169 = vset.pattern.permute.xlu1 %v1202_v9 }
  0x30   : > { %326 = vperm.xlu0 %1166, %v245_v5   ;;  %1170 = vset.pattern.permute.xlu2 %v1202_v9 }
  0x31   : > { %330 = vperm.xlu1 %1169, %v246_v0   ;;  %334 = vperm.xlu2 %1170, %v247_v4  }
  0x38   : > { %1179 = vset.pattern.permute.xlu0 %v1203_v10 }
  0x39   : > { %1171 = vset.pattern.permute.xlu1 %v1204_v11  ;;  %392 = vperm.xlu0 %1179, %v1251_v1  }
  0x3a   : > { %1172 = vset.pattern.permute.xlu2 %v1203_v10  ;;  %482 = vperm.xlu1 %1171, %v249_v7  }
  0x3b   : > { %400 = vperm.xlu2 %1172, %v246_v0  }
  0x41   : > { %1180 = vset.pattern.permute.xlu0 %v1204_v11 }
  0x42   : > { %1173 = vset.pattern.permute.xlu1 %v1203_v10  ;;  %478 = vperm.xlu0 %1180, %v248_v8  }
  0x43   : > { %1174 = vset.pattern.permute.xlu2 %v1202_v9  ;;  %404 = vperm.xlu1 %1173, %v247_v4  }
  0x44   : > { %322 = vperm.xlu2 %1174, %v1251_v1  }
  0x4a   : > { %466 = vperm.xlu0 %1180, %v245_v5  }
  0x4b   : > { %1175 = vset.pattern.permute.xlu1 %v1204_v11 }
  0x4c   : > { %1176 = vset.pattern.permute.xlu2 %v1204_v11  ;;  %470 = vperm.xlu1 %1175, %v246_v0  }
  0x4d   : > { %474 = vperm.xlu2 %1176, %v247_v4  }
  0x52   : > { %454 = vperm.xlu0 %1180, %v1256_v2  }
  0x54   : > { %1177 = vset.pattern.permute.xlu1 %v1201_v3 }
  0x55   : > { %1178 = vset.pattern.permute.xlu2 %v1201_v3  ;;  %563 = vperm.xlu1 %1177, %v529_v12  }
  0x56   : > { %568 = vperm.xlu2 %1178, %v530_v13  }
  0x5a   : > { %1191 = vset.pattern.permute.xlu0 %v1201_v3 }
  0x5b   : > { %548 = vperm.xlu0 %1191, %v526_v14  }
  0x5d   : > { %1181 = vset.pattern.permute.xlu1 %v1203_v10 }
  0x5e   : > { %1182 = vset.pattern.permute.xlu2 %v1202_v9  ;;  %396 = vperm.xlu1 %1181, %v245_v5  }
  0x5f   : > { %314 = vperm.xlu2 %1182, %v1256_v2  }
  0x66   : > { %1183 = vset.pattern.permute.xlu1 %v1202_v9 }
  0x67   : > { %318 = vperm.xlu1 %1183, %v1272_v6   ;;  %1184 = vset.pattern.permute.xlu2 %v1204_v11  ;;  %v1298_v15 = vpop.permute.xlu2 %272 }
  0x68   : > { %462 = vperm.xlu2 %1184, %v1251_v1  }
  0x6f   : > { %1185 = vset.pattern.permute.xlu1 %v1201_v3  ;;  %v1308_v18 = vpop.permute.xlu2 %277 }
  0x70   : > { %553 = vperm.xlu1 %1185, %v527_v16   ;;  %1186 = vset.pattern.permute.xlu2 %v1201_v3 }
  0x71   : > { %558 = vperm.xlu2 %1186, %v528_v17  }
  0x78   : > { %1187 = vset.pattern.permute.xlu1 %v1203_v10 }
  0x79   : > { %384 = vperm.xlu1 %1187, %v1256_v2   ;;  %1188 = vset.pattern.permute.xlu2 %v1203_v10  ;;  %v1312_v19 = vpop.permute.xlu2 %338 }
  0x7a   : > { %388 = vperm.xlu2 %1188, %v1272_v6   ;;  %v363_v7 = vmul.f32 %v1353_v48, %v1312_v19  ;;  %v364_v8 = vmul.f32 %v1355_v49, %v1312_v19 }
  0x80   : > { %v1315_v20 = vpop.permute.xlu1 %262  ;;  %v1317_v21 = vpop.permute.xlu0 %252 }
  0x81   : > { %1189 = vset.pattern.permute.xlu1 %v1204_v11 }
  0x82   : > { %458 = vperm.xlu1 %1189, %v1272_v6   ;;  %1190 = vset.pattern.permute.xlu2 %v1201_v3  ;;  %v413_v23 = vpop.permute.xlu2 %412 }
  0x83   : > { %543 = vperm.xlu2 %1190, %v525_v22   ;;  %v435_v0 = vmul.f32 %v1363_v55, %v413_v23  ;;  %v436_v1 = vmul.f32 %v1365_v56, %v413_v23 }
  0x88   : > { %v1324_v24 = vpop.permute.xlu1 %267  ;;  %v1332_v27 = vpop.permute.xlu0 %257 }
  0x8a   : > { %1192 = vset.pattern.permute.xlu1 %v1201_v3 }
  0x8b   : > { %533 = vperm.xlu1 %1192, %v523_v25   ;;  %538 = vperm.xlu2 %1190, %v524_v26   ;;  %v1335_v28 = vpop.permute.xlu2 %334 }
  0x90   : > { %v288_v29 = vpop.permute.xlu1 %287  ;;  %v283_v30 = vpop.permute.xlu0 %282 }
  0x91   : > { %v311_v59 = vmul.f32 %v1357_v52, %v288_v29  ;;  %v312_v60 = vmul.f32 %v1359_v53, %v288_v29  ;;  %v309_v9 = vmul.f32 %v1357_v52, %v283_v30  ;;  %v310_v10 = vmul.f32 %v1359_v53, %v283_v30 }
  0x93   : > { %v379_v23 = vadd.f32 %v363_v7, %v309_v9  ;;  %v380_v25 = vadd.f32 %v364_v8, %v310_v10  ;;  %v304_v7 = vmul.f32 %v1359_v53, %v1324_v24  ;;  %v361_v8 = vmul.f32 %v1353_v48, %v1335_v28 }
  0x94   : > { %v362_v9 = vmul.f32 %v1355_v49, %v1335_v28 }
  0x95   : > { %v1337_v31 = vpop.permute.xlu2 %400 }
  0x99   : > { %v409_v32 = vpop.permute.xlu1 %408 }
  0x9a   : > { %v343_v33 = vpop.permute.xlu0 %342  ;;  %v433_v14 = vmul.f32 %v1363_v55, %v409_v32  ;;  %v434_v16 = vmul.f32 %v1365_v56, %v409_v32 }
  0x9b   : > { %v365_v57 = vmul.f32 %v1353_v48, %v343_v33  ;;  %v366_v58 = vmul.f32 %v1355_v49, %v343_v33 }
  0x9c   : > { %v449_v30 = vadd.f32 %v433_v14, %v379_v23 }
  0x9d   : > { %v381_v2 = vadd.f32 %v365_v57, %v311_v59  ;;  %v382_v3 = vadd.f32 %v366_v58, %v312_v60 }
  0x9e   : > { %v1340_v34 = vpop.permute.xlu2 %322 }
  0x9f   : > { %v451_v11 = vadd.f32 %v435_v0, %v381_v2  ;;  %v452_v12 = vadd.f32 %v436_v1, %v382_v3 }
  0xa2   : > { %v1344_v36 = vpop.permute.xlu0 %326 }
  0xa3   : > { %v1342_v35 = vpop.permute.xlu1 %330  ;;  %v358_v2 = vmul.f32 %v1355_v49, %v1344_v36 }
  0xa7   : > { %v1346_v37 = vpop.permute.xlu2 %474 }
  0xab   : > { %v1351_v45 = vpop.permute.xlu0 %392 }
  0xac   : > { %v483_v38 = vpop.permute.xlu1 %482 }
  0xad   : > { %v505_v5 = vmul.f32 %v1371_v61, %v483_v38  ;;  %v506_v6 = vmul.f32 %v1373_v62, %v483_v38  ;;  %v450_v38 = vadd.f32 %v434_v16, %v380_v25  ;;  %v308_v16 = vmul.f32 %v1359_v53, %v1308_v18 }
  0xaf   : > { %v521_v17 = vadd.f32 %v505_v5, %v451_v11  ;;  %v522_v22 = vadd.f32 %v506_v6, %v452_v12  ;;  %v303_v6 = vmul.f32 %v1357_v52, %v1324_v24  ;;  %v374_v11 = vadd.f32 %v358_v2, %v304_v7 }
  0xb0   : > { %v569_v42 = vpop.permute.xlu2 %568  ;;  %v307_v24 = vmul.f32 %v1357_v52, %v1308_v18  ;;  %v355_v18 = vmul.f32 %v1353_v48, %v1340_v34 }
  0xb1   : > { %v585_v39 = vadd.f32 %v569_v42, %v521_v17  ;;  %v586_v40 = vadd.f32 %v569_v42, %v522_v22  ;;  %v357_v42 = vmul.f32 %v1353_v48, %v1344_v36 }
  0xb3   : > { %v617_v46 = vmul.f32 0.2, %v585_v39  ;;  %v618_v32 = vmul.f32 0.2, %v586_v40  ;;  %vm601_vm0 = vcmp.ge.f32.partialorder %v585_v39, 0.0  ;;  %vm602_vm1 = vcmp.ge.f32.partialorder %v586_v40, 0.0 }
  0xb4   : > { %v479_v4 = vpop.permute.xlu0 %478  ;;  %v373_v10 = vadd.f32 %v357_v42, %v303_v6 }
  0xb5   : > { %v1361_v54 = vpop.permute.xlu1 %404  ;;  %v503_v26 = vmul.f32 %v1371_v61, %v479_v4  ;;  %v504_v19 = vmul.f32 %v1373_v62, %v479_v4  ;;  %v633_v60 = vsel %vm601_vm0, %v585_v39, %v617_v46  ;;  %v634_v1 = vsel %vm602_vm1, %v586_v40, %v618_v32 }
  0xb6   : > { %v431_v28 = vmul.f32 %v1363_v55, %v1361_v54  ;;  %v432_v23 = vmul.f32 %v1365_v56, %v1361_v54  ;;  %v377_v39 = vadd.f32 %v361_v8, %v307_v24  ;;  %v378_v40 = vadd.f32 %v362_v9, %v308_v16 }
  0xb7   : > { %v519_v41 = vadd.f32 %v503_v26, %v449_v30  ;;  %v520_v43 = vadd.f32 %v504_v19, %v450_v38  ;;  %v301_v19 = vmul.f32 %v1357_v52, %v1315_v20  ;;  %v302_v30 = vmul.f32 %v1359_v53, %v1315_v20 }
  0xb8   : > { %v359_v54 = vmul.f32 %v1353_v48, %v1342_v35  ;;  %v426_v20 = vmul.f32 %v1365_v56, %v1351_v45  ;;  %v502_v32 = vmul.f32 %v1373_v62, %v1346_v37  ;;  %vm699_vm0 = vcmask 523264  }
  0xb9   : > { %v1375_v63 = vpop.permute.xlu2 %314  ;;  %vm870_vm1 = vcmask 7168  }
  0xbc   : > { %v467_v33 = vpop.permute.xlu0 %466 }
  0xbd   : > { %v497_v17 = vmul.f32 %v1371_v61, %v467_v33  ;;  %v498_v22 = vmul.f32 %v1373_v62, %v467_v33  ;;  %v356_v33 = vmul.f32 %v1355_v49, %v1340_v34  ;;  %v501_v34 = vmul.f32 %v1371_v61, %v1346_v37 }
  0xbe   : > { %v1387_v13 = vpop.permute.xlu1 %470  ;;  %v429_v37 = vmul.f32 %v1363_v55, %v1337_v31 }
  0xc2   : > { %v1393_v29 = vpop.permute.xlu2 %462 }
  0xc4   : > { %v1401_v3 = vpop.permute.xlu0 %454 }
  0xc7   : > { %v564_v44 = vpop.permute.xlu1 %563 }
  0xc8   : > { %v583_v47 = vadd.f32 %v564_v44, %v519_v41  ;;  %v584_v50 = vadd.f32 %v564_v44, %v520_v43  ;;  %v360_v41 = vmul.f32 %v1355_v49, %v1342_v35  ;;  %v425_v43 = vmul.f32 %v1363_v55, %v1351_v45 }
  0xc9   : > { %v495_v35 = vmul.f32 %v1371_v61, %v1393_v29  ;;  %v305_v45 = vmul.f32 %v1357_v52, %v1298_v15 }
  0xca   : > { %v615_v51 = vmul.f32 0.2, %v583_v47  ;;  %v616_v57 = vmul.f32 0.2, %v584_v50  ;;  %vm599_vm2 = vcmp.ge.f32.partialorder %v583_v47, 0.0  ;;  %vm600_vm3 = vcmp.ge.f32.partialorder %v584_v50, 0.0 }
  0xcb   : > { %v1395_v58 = vpop.permute.xlu2 %558  ;;  %v375_v7 = vadd.f32 %v359_v54, %v305_v45 }
  0xcc   : > { %v631_v59 = vsel %vm599_vm2, %v583_v47, %v615_v51  ;;  %v632_v0 = vsel %vm600_vm3, %v584_v50, %v616_v57  ;;  %v447_v47 = vadd.f32 %v431_v28, %v377_v39  ;;  %v448_v50 = vadd.f32 %v432_v23, %v378_v40 }
  0xcd   : > { %v657_v4 = vpack.c.bf16 %v633_v60, %v631_v59  ;;  %v658_v5 = vpack.c.bf16 %v634_v1, %v632_v0  ;;  %v549_v51 = vpop.permute.xlu0 %548  ;;  %v371_v57 = vadd.f32 %v355_v18, %v301_v19  ;;  %v372_v59 = vadd.f32 %v356_v33, %v302_v30 }
  0xce   : > { %v496_v60 = vmul.f32 %v1373_v62, %v1393_v29  ;;  %v306_v0 = vmul.f32 %v1359_v53, %v1298_v15  ;;  %v430_v1 = vmul.f32 %v1365_v56, %v1337_v31  ;;  %v517_v29 = vadd.f32 %v501_v34, %v447_v47 }
  0xcf   : > { %728 = vmatpush.bf16.msra.mxu0 %v657_v4  ;;  %1142 = vmatpush.bf16.msra.mxu2 %v657_v4  ;;  %v441_v2 = vadd.f32 %v425_v43, %v371_v57  ;;  %v442_v4 = vadd.f32 %v426_v20, %v372_v59  ;;  %v518_v9 = vadd.f32 %v502_v32, %v448_v50 }
  0xd0   : > { %777 = vmatpush.bf16.msra.mxu1 %v658_v5  ;;  %1146 = vmatpush.bf16.msra.mxu3 %v658_v5  ;;  %v397_v36 = vpop.permute.xlu1 %396  ;;  %v376_v8 = vadd.f32 %v360_v41, %v306_v0  ;;  %v499_v15 = vmul.f32 %v1371_v61, %v1387_v13  ;;  %v445_v28 = vadd.f32 %v429_v37, %v375_v7 }
  0xd1   : > { %v427_v12 = vmul.f32 %v1363_v55, %v397_v36  ;;  %v428_v14 = vmul.f32 %v1365_v56, %v397_v36  ;;  %v511_v36 = vadd.f32 %v495_v35, %v441_v2  ;;  %v582_v31 = vadd.f32 %v1395_v58, %v518_v9 }
  0xd2   : > { %v446_v23 = vadd.f32 %v430_v1, %v376_v8  ;;  %v299_v0 = vmul.f32 %v1357_v52, %v1332_v27  ;;  %v300_v37 = vmul.f32 %v1359_v53, %v1332_v27  ;;  %v297_v7 = vmul.f32 %v1357_v52, %v1317_v21 }
  0xd3   : > { %v443_v25 = vadd.f32 %v427_v12, %v373_v10  ;;  %v444_v26 = vadd.f32 %v428_v14, %v374_v11  ;;  %v512_v10 = vadd.f32 %v496_v60, %v442_v4  ;;  %v500_v11 = vmul.f32 %v1373_v62, %v1387_v13 }
  0xd4   : > { %v1431_v38 = vpop.permute.xlu2 %388  ;;  %v581_v12 = vadd.f32 %v1395_v58, %v517_v29  ;;  %v614_v30 = vmul.f32 0.2, %v582_v31  ;;  %v515_v13 = vadd.f32 %v499_v15, %v445_v28  ;;  %vm598_vm9 = vcmp.ge.f32.partialorder %v582_v31, 0.0 }
  0xd5   : > { %v513_v44 = vadd.f32 %v497_v17, %v443_v25  ;;  %v514_v46 = vadd.f32 %v498_v22, %v444_v26  ;;  %v516_v18 = vadd.f32 %v500_v11, %v446_v23  ;;  %v423_v1 = vmul.f32 %v1363_v55, %v1431_v38 }
  0xd6   : > { %v613_v19 = vmul.f32 0.2, %v581_v12  ;;  %vm597_vm8 = vcmp.ge.f32.partialorder %v581_v12, 0.0  ;;  %v424_v2 = vmul.f32 %v1365_v56, %v1431_v38  ;;  %v298_v27 = vmul.f32 %v1359_v53, %v1317_v21 }
  0xd7   : > { %v577_v5 = vadd.f32 %v549_v51, %v513_v44  ;;  %v578_v6 = vadd.f32 %v549_v51, %v514_v46  ;;  %v630_v51 = vsel %vm598_vm9, %v582_v31, %v614_v30  ;;  %v491_v21 = vmul.f32 %v1371_v61, %v1401_v3 }
  0xd8   : > { %v629_v47 = vsel %vm597_vm8, %v581_v12, %v613_v19  ;;  %v492_v53 = vmul.f32 %v1373_v62, %v1401_v3 }
  0xd9   : > { %v319_v42 = vpop.permute.xlu1 %318  ;;  %v609_v24 = vmul.f32 0.2, %v577_v5  ;;  %v610_v16 = vmul.f32 0.2, %v578_v6  ;;  %vm593_vm4 = vcmp.ge.f32.partialorder %v577_v5, 0.0  ;;  %vm594_vm5 = vcmp.ge.f32.partialorder %v578_v6, 0.0 }
  0xda   : > { %v353_v60 = vmul.f32 %v1353_v48, %v319_v42  ;;  %v354_v45 = vmul.f32 %v1355_v49, %v319_v42  ;;  %v351_v42 = vmul.f32 %v1353_v48, %v1375_v63 }
  0xdb   : > { %v625_v58 = vsel %vm593_vm4, %v577_v5, %v609_v24  ;;  %v626_v54 = vsel %vm594_vm5, %v578_v6, %v610_v16  ;;  %v352_v6 = vmul.f32 %v1355_v49, %v1375_v63 }
  0xdc   : > { %v369_v4 = vadd.f32 %v353_v60, %v299_v0  ;;  %v370_v5 = vadd.f32 %v354_v45, %v300_v37  ;;  %v367_v15 = vadd.f32 %v351_v42, %v297_v7 }
  0xdd   : > { %v544_v14 = vpop.permute.xlu2 %543  ;;  %v368_v11 = vadd.f32 %v352_v6, %v298_v27 }
  0xde   : > { %v575_v17 = vadd.f32 %v544_v14, %v511_v36  ;;  %v576_v22 = vadd.f32 %v544_v14, %v512_v10  ;;  %v439_v10 = vadd.f32 %v423_v1, %v369_v4  ;;  %v440_v48 = vadd.f32 %v424_v2, %v370_v5 }
  0xe0   : > { %v607_v25 = vmul.f32 0.2, %v575_v17  ;;  %v608_v26 = vmul.f32 0.2, %v576_v22  ;;  %vm591_vm6 = vcmp.ge.f32.partialorder %v575_v17, 0.0  ;;  %vm592_vm7 = vcmp.ge.f32.partialorder %v576_v22, 0.0 }
  0xe2   : > { %v554_v33 = vpop.permute.xlu1 %553  ;;  %v623_v39 = vsel %vm591_vm6, %v575_v17, %v607_v25  ;;  %v624_v40 = vsel %vm592_vm7, %v576_v22, %v608_v26 }
  0xe3   : > { %v579_v41 = vadd.f32 %v554_v33, %v515_v13  ;;  %v580_v43 = vadd.f32 %v554_v33, %v516_v18  ;;  %v653_v20 = vpack.c.bf16 %v625_v58, %v623_v39  ;;  %v654_v44 = vpack.c.bf16 %v626_v54, %v624_v40  ;;  %v1134_v18 = vld [vmem:[%s1611_s3] sm:$0xff]  ;;  %v1135_v39 = vld [vmem:[%s1611_s3 + $0x8] sm:$0xff]  ;;  %v1136_v40 = vld [vmem:[%s1611_s3 + $0x10] sm:$0xff] }
  0xe4   : > { %v1138_v33 = vld [vmem:[%s1611_s3 + $0x20] sm:$0xff]  ;;  %v1139_v58 = vld [vmem:[%s1611_s3 + $0x28] sm:$0xff]  ;;  %v1140_v54 = vld [vmem:[%s1611_s3 + $0x30] sm:$0xff] }
  0xe5   : > { %v611_v46 = vmul.f32 0.2, %v579_v41  ;;  %v612_v34 = vmul.f32 0.2, %v580_v43  ;;  %vm595_vm10 = vcmp.ge.f32.partialorder %v579_v41, 0.0  ;;  %vm596_vm11 = vcmp.ge.f32.partialorder %v580_v43, 0.0  ;;  %v539_v31 = vpop.permute.xlu2 %538 }
  0xe7   : > { %v627_v32 = vsel %vm595_vm10, %v579_v41, %v611_v46  ;;  %v628_v50 = vsel %vm596_vm11, %v580_v43, %v612_v34  ;;  %v1141_v41 = vld [vmem:[%s1611_s3 + $0x38] sm:$0xff] }
  0xe8   : > { %v655_v57 = vpack.c.bf16 %v629_v47, %v627_v32  ;;  %v656_v59 = vpack.c.bf16 %v630_v51, %v628_v50  ;;  %v1137_v43 = vld [vmem:[%s1611_s3 + $0x18] sm:$0xff] }
  0xea   : > { %729 = vmatpush.bf16.msra.mxu0 %v655_v57  ;;  %1143 = vmatpush.bf16.msra.mxu2 %v655_v57 }
  0xeb   : > { %778 = vmatpush.bf16.msra.mxu1 %v656_v59  ;;  %1147 = vmatpush.bf16.msra.mxu3 %v656_v59  ;;  %v385_v35 = vpop.permute.xlu1 %384 }
  0xec   : > { %v421_v8 = vmul.f32 %v1363_v55, %v385_v35  ;;  %v422_v29 = vmul.f32 %v1365_v56, %v385_v35 }
  0xee   : > { %730 = vmatpush.bf16.msra.mxu0 %v653_v20  ;;  %1144 = vmatpush.bf16.msra.mxu2 %v653_v20  ;;  %v437_v12 = vadd.f32 %v421_v8, %v367_v15  ;;  %v438_v52 = vadd.f32 %v422_v29, %v368_v11 }
  0xef   : > { %779 = vmatpush.bf16.msra.mxu1 %v654_v44  ;;  %1148 = vmatpush.bf16.msra.mxu3 %v654_v44 }
  0xf0   : > { %v507_v14 = vadd.f32 %v491_v21, %v437_v12  ;;  %v508_v24 = vadd.f32 %v492_v53, %v438_v52 }
  0xf4   : > { %v459_v9 = vpop.permute.xlu1 %458 }
  0xf5   : > { %v493_v38 = vmul.f32 %v1371_v61, %v459_v9  ;;  %v494_v36 = vmul.f32 %v1373_v62, %v459_v9 }
  0xf7   : > { %v509_v49 = vadd.f32 %v493_v38, %v439_v10  ;;  %v510_v63 = vadd.f32 %v494_v36, %v440_v48 }
  0xf9   : > { %v573_v55 = vadd.f32 %v539_v31, %v509_v49  ;;  %v574_v56 = vadd.f32 %v539_v31, %v510_v63 }
  0xfb   : > { %v605_v17 = vmul.f32 0.2, %v573_v55  ;;  %v606_v22 = vmul.f32 0.2, %v574_v56  ;;  %vm589_vm12 = vcmp.ge.f32.partialorder %v573_v55, 0.0  ;;  %vm590_vm13 = vcmp.ge.f32.partialorder %v574_v56, 0.0 }
  0xfd   : > { %v534_v16 = vpop.permute.xlu1 %533  ;;  %v621_v61 = vsel %vm589_vm12, %v573_v55, %v605_v17  ;;  %v622_v13 = vsel %vm590_vm13, %v574_v56, %v606_v22 }
  0xfe   : > { %v571_v28 = vadd.f32 %v534_v16, %v507_v14  ;;  %v572_v23 = vadd.f32 %v534_v16, %v508_v24 }
 0x100   : > { %v603_v25 = vmul.f32 0.2, %v571_v28  ;;  %v604_v26 = vmul.f32 0.2, %v572_v23  ;;  %vm587_vm14 = vcmp.ge.f32.partialorder %v571_v28, 0.0  ;;  %vm588_vm15 = vcmp.ge.f32.partialorder %v572_v23, 0.0 }
 0x102   : > { %v619_v19 = vsel %vm587_vm14, %v571_v28, %v603_v25  ;;  %v620_v30 = vsel %vm588_vm15, %v572_v23, %v604_v26 }
 0x103   : > { %v651_v62 = vpack.c.bf16 %v621_v61, %v619_v19  ;;  %v652_v3 = vpack.c.bf16 %v622_v13, %v620_v30 }
 0x105   : > { %731 = vmatpush.bf16.msra.mxu0 %v651_v62  ;;  %1145 = vmatpush.bf16.msra.mxu2 %v651_v62 }
 0x106   : > { %780 = vmatpush.bf16.msra.mxu1 %v652_v3  ;;  %1149 = vmatpush.bf16.msra.mxu3 %v652_v3 }
 0x108   : > { %1114 = vmatmul.msk.bf16.vlgmr.msra.gmra.mxu0 %vm699_vm0, %v1134_v18  ;;  %1118 = vmatmul.msk.bf16.vlgmr.msra.gmra.mxu2 %vm699_vm0, %v1138_v33 }
 0x109   : > { %1122 = vmatmul.msk.bf16.vlgmr.msra.gmra.mxu1 %vm699_vm0, %v1134_v18  ;;  %1126 = vmatmul.msk.bf16.vlgmr.msra.gmra.mxu3 %vm699_vm0, %v1138_v33 }
 0x118   : > { %1115 = vmatmul.msk.bf16.gmra.mxu0 %vm699_vm0, %v1135_v39  ;;  %1119 = vmatmul.msk.bf16.gmra.mxu2 %vm699_vm0, %v1139_v58 }
 0x119   : > { %1123 = vmatmul.msk.bf16.gmra.mxu1 %vm699_vm0, %v1135_v39  ;;  %1127 = vmatmul.msk.bf16.gmra.mxu3 %vm699_vm0, %v1139_v58 }
 0x128   : > { %1116 = vmatmul.msk.bf16.gmra.mxu0 %vm699_vm0, %v1136_v40  ;;  %1120 = vmatmul.msk.bf16.gmra.mxu2 %vm699_vm0, %v1140_v54 }
 0x129   : > { %1124 = vmatmul.msk.bf16.gmra.mxu1 %vm699_vm0, %v1136_v40  ;;  %1128 = vmatmul.msk.bf16.gmra.mxu3 %vm699_vm0, %v1140_v54 }
 0x138   : > { %1121 = vmatmul.msk.bf16.gmra.mxu2 %vm699_vm0, %v1141_v41  ;;  %1117 = vmatmul.msk.bf16.gmra.mxu0 %vm699_vm0, %v1137_v43 }
 0x139   : > { %1129 = vmatmul.msk.bf16.gmra.mxu3 %vm699_vm0, %v1141_v41  ;;  %1125 = vmatmul.msk.bf16.gmra.mxu1 %vm699_vm0, %v1137_v43 }
 0x185   : > { %v733_v20 = vpop.f32.mrf.mxu0 }
 0x186   : > { %v782_v44 = vpop.f32.mrf.mxu1  ;;  %v887_v34 = vmul.f32 %v733_v20, %v733_v20 }
 0x187   : > { %v822_v46 = vadd.f32 %v782_v44, %v733_v20  ;;  %v888_v32 = vmul.f32 %v782_v44, %v782_v44 }
 0x189   : > { %823 = vadd.xlane.f32.xlu1 %v822_v46  ;;  %v919_v60 = vadd.f32 %v888_v32, %v887_v34 }
 0x18b   : > { %v753_v47 = vpop.f32.mrf.mxu2 }
 0x18c   : > { %v903_v50 = vmul.f32 %v753_v47, %v753_v47  ;;  %v802_v51 = vpop.f32.mrf.mxu3 }
 0x18d   : > { %v904_v57 = vmul.f32 %v802_v51, %v802_v51  ;;  %v735_v59 = vpop.f32.mrf.mxu0  ;;  %v846_v35 = vadd.f32 %v802_v51, %v753_v47 }
 0x18e   : > { %v784_v45 = vpop.f32.mrf.mxu1  ;;  %v889_v8 = vmul.f32 %v735_v59, %v735_v59 }
 0x18f   : > { %847 = vadd.xlane.f32.xlu2 %v846_v35  ;;  %v943_v0 = vadd.f32 %v904_v57, %v903_v50  ;;  %v825_v5 = vadd.f32 %v784_v45, %v735_v59  ;;  %v890_v29 = vmul.f32 %v784_v45, %v784_v45 }
 0x191   : > { %944 = vadd.xlane.f32.xlu0 %v943_v0  ;;  %920 = vadd.xlane.f32.xlu1 %v919_v60  ;;  %v922_v36 = vadd.f32 %v890_v29, %v889_v8 }
 0x193   : > { %v755_v37 = vpop.f32.mrf.mxu2 }
 0x194   : > { %v905_v1 = vmul.f32 %v755_v37, %v755_v37  ;;  %v804_v2 = vpop.f32.mrf.mxu3 }
 0x195   : > { %v906_v4 = vmul.f32 %v804_v2, %v804_v2  ;;  %v738_v42 = vpop.f32.mrf.mxu0  ;;  %v849_v7 = vadd.f32 %v804_v2, %v755_v37 }
 0x196   : > { %v787_v6 = vpop.f32.mrf.mxu1  ;;  %v891_v49 = vmul.f32 %v738_v42, %v738_v42 }
 0x197   : > { %826 = vadd.xlane.f32.xlu2 %v825_v5  ;;  %v946_v27 = vadd.f32 %v906_v4, %v905_v1  ;;  %v828_v48 = vadd.f32 %v787_v6, %v738_v42  ;;  %v892_v63 = vmul.f32 %v787_v6, %v787_v6 }
 0x199   : > { %850 = vadd.xlane.f32.xlu0 %v849_v7  ;;  %947 = vadd.xlane.f32.xlu1 %v946_v27  ;;  %v925_v21 = vadd.f32 %v892_v63, %v891_v49 }
 0x19b   : > { %v758_v9 = vpop.f32.mrf.mxu2 }
 0x19c   : > { %v807_v38 = vpop.f32.mrf.mxu3  ;;  %v907_v14 = vmul.f32 %v758_v9, %v758_v9 }
 0x19d   : > { %v852_v10 = vadd.f32 %v807_v38, %v758_v9  ;;  %v740_v15 = vpop.f32.mrf.mxu0  ;;  %v908_v24 = vmul.f32 %v807_v38, %v807_v38 }
 0x19e   : > { %v789_v11 = vpop.f32.mrf.mxu1  ;;  %v893_v12 = vmul.f32 %v740_v15, %v740_v15 }
 0x19f   : > { %923 = vadd.xlane.f32.xlu2 %v922_v36  ;;  %v894_v52 = vmul.f32 %v789_v11, %v789_v11  ;;  %v831_v31 = vadd.f32 %v789_v11, %v740_v15  ;;  %v949_v23 = vadd.f32 %v908_v24, %v907_v14 }
 0x1a1   : > { %853 = vadd.xlane.f32.xlu1 %v852_v10  ;;  %829 = vadd.xlane.f32.xlu0 %v828_v48  ;;  %v928_v53 = vadd.f32 %v894_v52, %v893_v12 }
 0x1a3   : > { %v760_v55 = vpop.f32.mrf.mxu2 }
 0x1a4   : > { %v809_v56 = vpop.f32.mrf.mxu3  ;;  %v909_v16 = vmul.f32 %v760_v55, %v760_v55 }
 0x1a5   : > { %v910_v17 = vmul.f32 %v809_v56, %v809_v56  ;;  %v743_v22 = vpop.f32.mrf.mxu0  ;;  %v855_v62 = vadd.f32 %v809_v56, %v760_v55 }
 0x1a6   : > { %v792_v28 = vpop.f32.mrf.mxu1  ;;  %v895_v58 = vmul.f32 %v743_v22, %v743_v22 }
 0x1a7   : > { %832 = vadd.xlane.f32.xlu2 %v831_v31  ;;  %v834_v25 = vadd.f32 %v792_v28, %v743_v22  ;;  %v952_v26 = vadd.f32 %v910_v17, %v909_v16  ;;  %v896_v40 = vmul.f32 %v792_v28, %v792_v28 }
 0x1a9   : > { %926 = vadd.xlane.f32.xlu0 %v925_v21  ;;  %929 = vadd.xlane.f32.xlu1 %v928_v53  ;;  %v931_v44 = vadd.f32 %v896_v40, %v895_v58 }
 0x1ab   : > { %v763_v19 = vpop.f32.mrf.mxu2 }
 0x1ac   : > { %v812_v61 = vpop.f32.mrf.mxu3  ;;  %v911_v30 = vmul.f32 %v763_v19, %v763_v19 }
 0x1ad   : > { %v912_v13 = vmul.f32 %v812_v61, %v812_v61  ;;  %v858_v3 = vadd.f32 %v812_v61, %v763_v19  ;;  %v745_v33 = vpop.f32.mrf.mxu0 }
 0x1ae   : > { %v794_v39 = vpop.f32.mrf.mxu1  ;;  %v897_v43 = vmul.f32 %v745_v33, %v745_v33 }
 0x1af   : > { %950 = vadd.xlane.f32.xlu2 %v949_v23  ;;  %v955_v18 = vadd.f32 %v912_v13, %v911_v30  ;;  %v898_v20 = vmul.f32 %v794_v39, %v794_v39  ;;  %v837_v35 = vadd.f32 %v794_v39, %v745_v33 }
 0x1b1   : > { %953 = vadd.xlane.f32.xlu0 %v952_v26  ;;  %835 = vadd.xlane.f32.xlu1 %v834_v25  ;;  %v934_v34 = vadd.f32 %v898_v20, %v897_v43 }
 0x1b3   : > { %v765_v54 = vpop.f32.mrf.mxu2 }
 0x1b4   : > { %v814_v41 = vpop.f32.mrf.mxu3  ;;  %v913_v48 = vmul.f32 %v765_v54, %v765_v54 }
 0x1b5   : > { %v861_v46 = vadd.f32 %v814_v41, %v765_v54  ;;  %v748_v32 = vpop.f32.mrf.mxu0  ;;  %v914_v15 = vmul.f32 %v814_v41, %v814_v41 }
 0x1b6   : > { %v797_v47 = vpop.f32.mrf.mxu1  ;;  %v899_v50 = vmul.f32 %v748_v32, %v748_v32 }
 0x1b7   : > { %856 = vadd.xlane.f32.xlu2 %v855_v62  ;;  %v900_v51 = vmul.f32 %v797_v47, %v797_v47  ;;  %v840_v45 = vadd.f32 %v797_v47, %v748_v32  ;;  %v958_v11 = vadd.f32 %v914_v15, %v913_v48 }
 0x1b9   : > { %859 = vadd.xlane.f32.xlu0 %v858_v3  ;;  %956 = vadd.xlane.f32.xlu1 %v955_v18  ;;  %v937_v60 = vadd.f32 %v900_v51, %v899_v50 }
 0x1bb   : > { %v768_v57 = vpop.f32.mrf.mxu2 }
 0x1bc   : > { %v817_v59 = vpop.f32.mrf.mxu3  ;;  %v915_v27 = vmul.f32 %v768_v57, %v768_v57 }
 0x1bd   : > { %v750_v0 = vpop.f32.mrf.mxu0  ;;  %v864_v1 = vadd.f32 %v817_v59, %v768_v57  ;;  %v916_v8 = vmul.f32 %v817_v59, %v817_v59 }
 0x1be   : > { %v799_v37 = vpop.f32.mrf.mxu1  ;;  %v901_v6 = vmul.f32 %v750_v0, %v750_v0 }
 0x1bf   : > { %932 = vadd.xlane.f32.xlu2 %v931_v44  ;;  %v843_v5 = vadd.f32 %v799_v37, %v750_v0  ;;  %v902_v7 = vmul.f32 %v799_v37, %v799_v37  ;;  %v961_v36 = vadd.f32 %v916_v8, %v915_v27 }
 0x1c1   : > { %862 = vadd.xlane.f32.xlu1 %v861_v46  ;;  %935 = vadd.xlane.f32.xlu0 %v934_v34  ;;  %v940_v38 = vadd.f32 %v902_v7, %v901_v6 }
 0x1c3   : > { %v770_v2 = vpop.f32.mrf.mxu2 }
 0x1c4   : > { %v819_v4 = vpop.f32.mrf.mxu3  ;;  %v917_v29 = vmul.f32 %v770_v2, %v770_v2 }
 0x1c5   : > { %v867_v42 = vadd.f32 %v819_v4, %v770_v2  ;;  %v918_v9 = vmul.f32 %v819_v4, %v819_v4 }
 0x1c7   : > { %838 = vadd.xlane.f32.xlu2 %v837_v35  ;;  %v964_v10 = vadd.f32 %v918_v9, %v917_v29 }
 0x1c9   : > { %938 = vadd.xlane.f32.xlu1 %v937_v60  ;;  %841 = vadd.xlane.f32.xlu0 %v840_v45 }
 0x1cf   : > { %865 = vadd.xlane.f32.xlu2 %v864_v1 }
 0x1d1   : > { %868 = vadd.xlane.f32.xlu0 %v867_v42  ;;  %844 = vadd.xlane.f32.xlu1 %v843_v5 }
 0x1d7   : > { %941 = vadd.xlane.f32.xlu2 %v940_v38 }
 0x1d9   : > { %962 = vadd.xlane.f32.xlu0 %v961_v36  ;;  %965 = vadd.xlane.f32.xlu1 %v964_v10 }
 0x1df   : > { %959 = vadd.xlane.f32.xlu2 %v958_v11 }
 0x1fc   : > { %v824_v49 = vpop.xlane.xlu1 %823 }
 0x1fd   : > { %871 = vst.msk [vmem:[%s1534_s30] sm:$0xff] %vm870_vm1, %v824_v49 }
 0x202   : > { %v848_v63 = vpop.xlane.xlu2 %847 }
 0x203   : > { %879 = vst.msk [vmem:[%s1534_s30 + $0x40] sm:$0xff] %vm870_vm1, %v848_v63 }
 0x204   : > { %v945_v12 = vpop.xlane.xlu0 %944  ;;  %v921_v52 = vpop.xlane.xlu1 %920 }
 0x205   : > { %975 = vst.msk [vmem:[%s1541_s8 + $0x40] sm:$0xff] %vm870_vm1, %v945_v12 }
 0x206   : > { %967 = vst.msk [vmem:[%s1541_s8] sm:$0xff] %vm870_vm1, %v921_v52 }
 0x20a   : > { %v827_v31 = vpop.xlane.xlu2 %826 }
 0x20b   : > { %872 = vst.msk [vmem:[%s1534_s30 + $0x8] sm:$0xff] %vm870_vm1, %v827_v31 }
 0x20c   : > { %v851_v21 = vpop.xlane.xlu0 %850  ;;  %v948_v53 = vpop.xlane.xlu1 %947 }
 0x20d   : > { %880 = vst.msk [vmem:[%s1534_s30 + $0x48] sm:$0xff] %vm870_vm1, %v851_v21 }
 0x20e   : > { %976 = vst.msk [vmem:[%s1541_s8 + $0x48] sm:$0xff] %vm870_vm1, %v948_v53 }
 0x212   : > { %v924_v55 = vpop.xlane.xlu2 %923 }
 0x213   : > { %968 = vst.msk [vmem:[%s1541_s8 + $0x8] sm:$0xff] %vm870_vm1, %v924_v55 }
 0x214   : > { %v854_v56 = vpop.xlane.xlu1 %853  ;;  %v830_v14 = vpop.xlane.xlu0 %829 }
 0x215   : > { %881 = vst.msk [vmem:[%s1534_s30 + $0x50] sm:$0xff] %vm870_vm1, %v854_v56 }
 0x216   : > { %873 = vst.msk [vmem:[%s1534_s30 + $0x10] sm:$0xff] %vm870_vm1, %v830_v14 }
 0x21a   : > { %v833_v24 = vpop.xlane.xlu2 %832 }
 0x21b   : > { %874 = vst.msk [vmem:[%s1534_s30 + $0x18] sm:$0xff] %vm870_vm1, %v833_v24 }
 0x21c   : > { %v927_v16 = vpop.xlane.xlu0 %926  ;;  %v930_v17 = vpop.xlane.xlu1 %929 }
 0x21d   : > { %969 = vst.msk [vmem:[%s1541_s8 + $0x10] sm:$0xff] %vm870_vm1, %v927_v16 }
 0x21e   : > { %970 = vst.msk [vmem:[%s1541_s8 + $0x18] sm:$0xff] %vm870_vm1, %v930_v17 }
 0x222   : > { %v951_v22 = vpop.xlane.xlu2 %950 }
 0x223   : > { %977 = vst.msk [vmem:[%s1541_s8 + $0x50] sm:$0xff] %vm870_vm1, %v951_v22 }
 0x224   : > { %v954_v28 = vpop.xlane.xlu0 %953  ;;  %v836_v23 = vpop.xlane.xlu1 %835 }
 0x225   : > { %978 = vst.msk [vmem:[%s1541_s8 + $0x58] sm:$0xff] %vm870_vm1, %v954_v28 }
 0x226   : > { %875 = vst.msk [vmem:[%s1534_s30 + $0x20] sm:$0xff] %vm870_vm1, %v836_v23 }
 0x22a   : > { %v857_v25 = vpop.xlane.xlu2 %856 }
 0x22b   : > { %882 = vst.msk [vmem:[%s1534_s30 + $0x58] sm:$0xff] %vm870_vm1, %v857_v25 }
 0x22c   : > { %v860_v26 = vpop.xlane.xlu0 %859  ;;  %v957_v19 = vpop.xlane.xlu1 %956 }
 0x22d   : > { %883 = vst.msk [vmem:[%s1534_s30 + $0x60] sm:$0xff] %vm870_vm1, %v860_v26 }
 0x22e   : > { %979 = vst.msk [vmem:[%s1541_s8 + $0x60] sm:$0xff] %vm870_vm1, %v957_v19 }
 0x232   : > { %v933_v61 = vpop.xlane.xlu2 %932 }
 0x233   : > { %971 = vst.msk [vmem:[%s1541_s8 + $0x20] sm:$0xff] %vm870_vm1, %v933_v61 }
 0x234   : > { %v863_v30 = vpop.xlane.xlu1 %862  ;;  %v936_v13 = vpop.xlane.xlu0 %935 }
 0x235   : > { %884 = vst.msk [vmem:[%s1534_s30 + $0x68] sm:$0xff] %vm870_vm1, %v863_v30 }
 0x236   : > { %972 = vst.msk [vmem:[%s1541_s8 + $0x28] sm:$0xff] %vm870_vm1, %v936_v13 }
 0x23a   : > { %v839_v62 = vpop.xlane.xlu2 %838 }
 0x23b   : > { %876 = vst.msk [vmem:[%s1534_s30 + $0x28] sm:$0xff] %vm870_vm1, %v839_v62 }
 0x23c   : > { %v939_v3 = vpop.xlane.xlu1 %938  ;;  %v842_v18 = vpop.xlane.xlu0 %841 }
 0x23d   : > { %973 = vst.msk [vmem:[%s1541_s8 + $0x30] sm:$0xff] %vm870_vm1, %v939_v3 }
 0x23e   : > { %877 = vst.msk [vmem:[%s1534_s30 + $0x30] sm:$0xff] %vm870_vm1, %v842_v18 }
 0x242   : > { %v866_v33 = vpop.xlane.xlu2 %865 }
 0x243   : > { %885 = vst.msk [vmem:[%s1534_s30 + $0x70] sm:$0xff] %vm870_vm1, %v866_v33 }
 0x244   : > { %v869_v39 = vpop.xlane.xlu0 %868  ;;  %v845_v58 = vpop.xlane.xlu1 %844 }
 0x245   : > { %886 = vst.msk [vmem:[%s1534_s30 + $0x78] sm:$0xff] %vm870_vm1, %v869_v39 }
 0x246   : > { %878 = vst.msk [vmem:[%s1534_s30 + $0x38] sm:$0xff] %vm870_vm1, %v845_v58 }
 0x24a   : > { %v942_v40 = vpop.xlane.xlu2 %941 }
 0x24b   : > { %974 = vst.msk [vmem:[%s1541_s8 + $0x38] sm:$0xff] %vm870_vm1, %v942_v40 }
 0x24c   : > { %v963_v54 = vpop.xlane.xlu0 %962  ;;  %v966_v41 = vpop.xlane.xlu1 %965 }
 0x24d   : > { %981 = vst.msk [vmem:[%s1541_s8 + $0x70] sm:$0xff] %vm870_vm1, %v963_v54 }
 0x24e   : > { %982 = vst.msk [vmem:[%s1541_s8 + $0x78] sm:$0xff] %vm870_vm1, %v966_v41 }
 0x252   : > { %v960_v43 = vpop.xlane.xlu2 %959 }
 0x253   : > { %980 = vst.msk [vmem:[%s1541_s8 + $0x68] sm:$0xff] %vm870_vm1, %v960_v43 }
 0x254 PF: > { %s16_s18 = sadd.s32 1, %s1199_s18  }
 0x255   : > { %p13_p5 = scmp.ge.s32.totalorder %s16_s18, 4  }
 0x257   :  { %15 = sbr.rel (!%p13_p5) target bundleno = 1 (0x1), region = 78 }

// kernel: pixel_discriminator_forward.3
= control target key start
LH: loop header
LB: loop body
LE: loop exit
PB: predicated region body
PF: predicated region fallthrough
CT: control target
= control target key end

     0   :  { %s1599_s24 = smov 0   ;;  %s2230_s0 = inlined_call_operand.vmem [shape: f32[4,512], index: 0, kind: input, shape index: {}]   ;;  %s2231_s1 = inlined_call_operand.vmem [shape: f32[64,4], index: 1, kind: input, shape index: {}]   ;;  %s2232_s2 = inlined_call_operand.vmem [shape: f32[64,1], index: 2, kind: input, shape index: {}]   ;;  %s2233_s3 = inlined_call_operand.vmem [shape: bf16[128,64], index: 3, kind: input, shape index: {}]   ;;  %s2234_s4 = inlined_call_operand.vmem [shape: f32[128,1], index: 4, kind: input, shape index: {}]   ;;  %s2235_s5 = inlined_call_operand.vmem [shape: f32[128,1], index: 5, kind: input, shape index: {}]   ;;  %s2236_s6 = inlined_call_operand.vmem [shape: f32[128,1], index: 6, kind: input, shape index: {}]   ;;  %s2237_s7 = inlined_call_operand.vmem [shape: f32[2,1,256], index: 7, kind: output, shape index: {}]  }
   0x1 LB: > { %s1605_s25 = sadd.s32 4294967295, %s1553_s24   ;;  %p1451_p0 = scmp.ge.s32.totalorder %s1553_s24, 1  ;;  %s1553_s24 = sphi %s1599_s24, %s17_s24  }
   0x2   : > { %p238_p1 = scmp.lt.s32.totalorder %s1553_s24, 3 }
   0x4   : > { %p239_p2 = pnand %p1451_p0, %p238_p1 }
   0x6   : > { %242 = sbr.rel (%p239_p2) target bundleno = 493 (0x1ed), region = 48 }
   0xb   : > { %v285_v0 = vld [vmem:[%s2231_s1 + $0x20] sm:$0xff]  ;;  %v283_v1 = vld [vmem:[%s2231_s1 + $0x10] sm:$0xff]  ;;  %v282_v2 = vld [vmem:[%s2231_s1 + $0x8] sm:$0xff]  ;;  %v1555_v3 = vmov 1   ;;  %v1556_v4 = vmov 0   ;;  %v1557_v10 = vmov 2  }
   0xc   : > { %1536 = vset.pattern.permute.xlu0 %v1555_v3  ;;  %1534 = vset.pattern.permute.xlu2 %v1556_v4  ;;  %v286_v5 = vld [vmem:[%s2231_s1 + $0x28] sm:$0xff]  ;;  %v284_v6 = vld [vmem:[%s2231_s1 + $0x18] sm:$0xff]  ;;  %v287_v7 = vld [vmem:[%s2231_s1 + $0x30] sm:$0xff]  ;;  %v1558_v11 = vmov 3   ;;  %s1452_s29 = sshll.u32 %s1605_s25, 1  ;;  %p275_p4 = scmp.lt.s32.totalorder %s1605_s25, 1 }
   0xd   : > { %1533 = vset.pattern.permute.xlu1 %v1556_v4  ;;  %311 = vperm.xlu2 %1534, %v285_v0   ;;  %v288_v8 = vld [vmem:[%s2231_s1 + $0x38] sm:$0xff]  ;;  %v281_v9 = vld [vmem:[%s2231_s1] sm:$0xff]  ;;  %v563_v12 = vld [vmem:[%s2232_s2 + $0x8] sm:$0xff]  ;;  %p270_p3 = scmp.lt.s32.totalorder %s1452_s29, 3 }
   0xe   : > { %301 = vperm.xlu1 %1533, %v283_v1   ;;  %357 = vperm.xlu0 %1536, %v282_v2   ;;  %v568_v13 = vld [vmem:[%s2232_s2 + $0x30] sm:$0xff]  ;;  %v862_v14 = vld [vmem:[%s2234_s4 + $0x8] sm:$0xff]  ;;  %v562_v16 = vld [vmem:[%s2232_s2] sm:$0xff]  ;;  %s2244_s25 = smov (!%p275_p4, %s1605_s25), 1 }
   0xf   : > { %v865_v17 = vld [vmem:[%s2234_s4 + $0x20] sm:$0xff]  ;;  %v564_v19 = vld [vmem:[%s2232_s2 + $0x10] sm:$0xff]  ;;  %v565_v20 = vld [vmem:[%s2232_s2 + $0x18] sm:$0xff]  ;;  %s2242_s29 = smov (!%p270_p3, %s1452_s29), 3  ;;  %s1454_s28 = sshll.u32 %s2244_s25, 1 }
  0x10   : > { %v868_v21 = vld [vmem:[%s2234_s4 + $0x38] sm:$0xff]  ;;  %v566_v22 = vld [vmem:[%s2232_s2 + $0x20] sm:$0xff]  ;;  %s1453_s17 = sshll.u32 %s2242_s29, 2  ;;  %v567_v23 = vld [vmem:[%s2232_s2 + $0x28] sm:$0xff]  ;;  %s278_s8 = scalar_lea.vmem %s2237_s7, %s1454_s28 }
  0x11   : > { %s273_s22 = scalar_lea.vmem %s2230_s0, %s1453_s17  ;;  %v871_v26 = vld [vmem:[%s2234_s4 + $0x50] sm:$0xff]  ;;  %v569_v29 = vld [vmem:[%s2232_s2 + $0x38] sm:$0xff]  ;;  %v861_v31 = vld [vmem:[%s2234_s4] sm:$0xff] }
  0x12   : > { %v1676_v25 = vld [vmem:[%s273_s22] sm:$0xff]  ;;  %v874_v38 = vld [vmem:[%s2234_s4 + $0x68] sm:$0xff]  ;;  %v863_v43 = vld [vmem:[%s2234_s4 + $0x10] sm:$0xff] }
  0x13   : > { %v384_v27 = vperm.slane %v1676_v25, 1  ;;  %v385_v28 = vperm.slane %v1676_v25, 5  ;;  %v330_v34 = vperm.slane %v1676_v25, 0  ;;  %v331_v35 = vperm.slane %v1676_v25, 4  ;;  %v864_v45 = vld [vmem:[%s2234_s4 + $0x18] sm:$0xff]  ;;  %v989_v58 = vld [vmem:[%s2235_s5] sm:$0xff] }
  0x14   : > { %v866_v59 = vld [vmem:[%s2234_s4 + $0x28] sm:$0xff]  ;;  %v867_v61 = vld [vmem:[%s2234_s4 + $0x30] sm:$0xff] }
  0x15   : > { %316 = vperm.xlu2 %1534, %v286_v5   ;;  %v1693_v36 = vperm.slane %v384_v27, 1  ;;  %v1695_v37 = vperm.slane %v385_v28, 1  ;;  %v1700_v39 = vperm.slane %v330_v34, 0  ;;  %v1702_v40 = vperm.slane %v331_v35, 0  ;;  %v998_v27 = vld [vmem:[%s2235_s5 + $0x48] sm:$0xff]  ;;  %v876_v28 = vld [vmem:[%s2234_s4 + $0x78] sm:$0xff] }
  0x16   : > { %306 = vperm.xlu1 %1533, %v284_v6   ;;  %377 = vperm.xlu0 %1536, %v287_v7  }
  0x1d   : > { %1535 = vset.pattern.permute.xlu2 %v1555_v3 }
  0x1e   : > { %326 = vperm.xlu1 %1533, %v288_v8   ;;  %1539 = vset.pattern.permute.xlu0 %v1557_v10 }
  0x1f   : > { %427 = vperm.xlu0 %1539, %v282_v2   ;;  %353 = vperm.xlu2 %1535, %v281_v9  }
  0x26   : > { %1537 = vset.pattern.permute.xlu1 %v1555_v3 }
  0x27   : > { %361 = vperm.xlu1 %1537, %v283_v1   ;;  %447 = vperm.xlu0 %1539, %v287_v7  }
  0x28   : > { %365 = vperm.xlu2 %1535, %v284_v6  }
  0x2f   : > { %369 = vperm.xlu1 %1537, %v285_v0   ;;  %1542 = vset.pattern.permute.xlu0 %v1558_v11 }
  0x30   : > { %373 = vperm.xlu2 %1535, %v286_v5   ;;  %497 = vperm.xlu0 %1542, %v282_v2  }
  0x37   : > { %381 = vperm.xlu1 %1537, %v288_v8  }
  0x38   : > { %1538 = vset.pattern.permute.xlu2 %v1557_v10  ;;  %517 = vperm.xlu0 %1542, %v287_v7  }
  0x39   : > { %423 = vperm.xlu2 %1538, %v281_v9  }
  0x3f   : > { %1540 = vset.pattern.permute.xlu1 %v1557_v10 }
  0x40   : > { %431 = vperm.xlu1 %1540, %v283_v1   ;;  %1544 = vset.pattern.permute.xlu0 %v1556_v4 }
  0x41   : > { %435 = vperm.xlu2 %1538, %v284_v6   ;;  %291 = vperm.xlu0 %1544, %v281_v9  }
  0x48   : > { %439 = vperm.xlu1 %1540, %v285_v0  }
  0x49   : > { %443 = vperm.xlu2 %1538, %v286_v5   ;;  %296 = vperm.xlu0 %1544, %v282_v2   ;;  %v870_v2 = vld [vmem:[%s2234_s4 + $0x48] sm:$0xff] }
  0x50   : > { %451 = vperm.xlu1 %1540, %v288_v8  }
  0x51   : > { %1541 = vset.pattern.permute.xlu2 %v1558_v11  ;;  %321 = vperm.xlu0 %1544, %v287_v7  }
  0x52   : > { %493 = vperm.xlu2 %1541, %v281_v9  }
  0x58   : > { %1543 = vset.pattern.permute.xlu1 %v1558_v11 }
  0x59   : > { %501 = vperm.xlu1 %1543, %v283_v1   ;;  %577 = vperm.xlu0 %1544, %v563_v12   ;;  %v869_v1 = vld [vmem:[%s2234_s4 + $0x40] sm:$0xff]  ;;  %v995_v12 = vld [vmem:[%s2235_s5 + $0x30] sm:$0xff] }
  0x5a   : > { %505 = vperm.xlu2 %1541, %v284_v6  }
  0x61   : > { %509 = vperm.xlu1 %1543, %v285_v0   ;;  %602 = vperm.xlu0 %1544, %v568_v13   ;;  %v992_v0 = vld [vmem:[%s2235_s5 + $0x18] sm:$0xff] }
  0x62   : > { %513 = vperm.xlu2 %1541, %v286_v5   ;;  %v872_v13 = vld [vmem:[%s2234_s4 + $0x58] sm:$0xff] }
  0x67   : > { %v1645_v15 = vpop.permute.xlu2 %311 }
  0x69   : > { %521 = vperm.xlu1 %1543, %v288_v8   ;;  %884 = vperm.xlu0 %1544, %v862_v14   ;;  %v873_v14 = vld [vmem:[%s2234_s4 + $0x60] sm:$0xff] }
  0x6a   : > { %1545 = vset.pattern.permute.xlu2 %v1556_v4 }
  0x6b   : > { %572 = vperm.xlu2 %1545, %v562_v16  }
  0x6f   : > { %v317_v18 = vpop.permute.xlu2 %316 }
  0x70   : > { %v346_v47 = vmul.f32 %v1700_v39, %v317_v18  ;;  %v347_v48 = vmul.f32 %v1702_v40, %v317_v18  ;;  %v345_v18 = vmul.f32 %v1702_v40, %v1645_v15 }
  0x71   : > { %1546 = vset.pattern.permute.xlu1 %v1556_v4  ;;  %899 = vperm.xlu0 %1544, %v865_v17   ;;  %v344_v17 = vmul.f32 %v1700_v39, %v1645_v15  ;;  %v875_v15 = vld [vmem:[%s2234_s4 + $0x70] sm:$0xff] }
  0x72   : > { %582 = vperm.xlu1 %1546, %v564_v19  }
  0x73   : > { %587 = vperm.xlu2 %1545, %v565_v20  }
  0x79   : > { %914 = vperm.xlu0 %1544, %v868_v21   ;;  %v1671_v24 = vpop.permute.xlu2 %353 }
  0x7a   : > { %592 = vperm.xlu1 %1546, %v566_v22  }
  0x7b   : > { %597 = vperm.xlu2 %1545, %v567_v23  }
  0x80   : > { %v302_v30 = vpop.permute.xlu1 %301  ;;  %v1689_v32 = vpop.permute.xlu0 %357 }
  0x81   : > { %929 = vperm.xlu0 %1544, %v871_v26   ;;  %v340_v5 = vmul.f32 %v1700_v39, %v302_v30  ;;  %v341_v6 = vmul.f32 %v1702_v40, %v302_v30 }
  0x82   : > { %607 = vperm.xlu1 %1546, %v569_v29   ;;  %v366_v33 = vpop.permute.xlu2 %365 }
  0x83   : > { %879 = vperm.xlu2 %1545, %v861_v31   ;;  %v396_v41 = vmul.f32 %v1693_v36, %v366_v33  ;;  %v397_v42 = vmul.f32 %v1695_v37, %v366_v33 }
  0x88   : > { %v307_v44 = vpop.permute.xlu1 %306  ;;  %v1712_v46 = vpop.permute.xlu0 %377 }
  0x89   : > { %v342_v49 = vmul.f32 %v1700_v39, %v307_v44  ;;  %v343_v50 = vmul.f32 %v1702_v40, %v307_v44  ;;  %944 = vperm.xlu0 %1544, %v874_v38   ;;  %v455_v44 = vperm.slane %v1676_v25, 6 }
  0x8a   : > { %889 = vperm.xlu1 %1546, %v863_v43   ;;  %v374_v51 = vpop.permute.xlu2 %373  ;;  %v454_v43 = vperm.slane %v1676_v25, 2 }
  0x8b   : > { %v1718_v52 = vadd.f32 %v396_v41, %v342_v49  ;;  %v1720_v53 = vadd.f32 %v397_v42, %v343_v50  ;;  %894 = vperm.xlu2 %1545, %v864_v45   ;;  %v400_v54 = vmul.f32 %v1693_v36, %v374_v51  ;;  %v401_v55 = vmul.f32 %v1695_v37, %v374_v51  ;;  %v1001_v45 = vld [vmem:[%s2235_s5 + $0x60] sm:$0xff] }
  0x8c   : > { %v1811_v49 = vperm.slane %v454_v43, 2  ;;  %v1813_v50 = vperm.slane %v455_v44, 2 }
  0x8d   : > { %v1724_v56 = vadd.f32 %v400_v54, %v346_v47  ;;  %v1726_v57 = vadd.f32 %v401_v55, %v347_v48  ;;  %v990_v47 = vld [vmem:[%s2235_s5 + $0x8] sm:$0xff]  ;;  %v991_v48 = vld [vmem:[%s2235_s5 + $0x10] sm:$0xff]  ;;  %v390_v54 = vmul.f32 %v1693_v36, %v1671_v24  ;;  %v391_v55 = vmul.f32 %v1695_v37, %v1671_v24 }
  0x90   : > { %v327_v60 = vpop.permute.xlu1 %326 }
  0x91   : > { %1007 = vperm.xlu0 %1544, %v989_v58   ;;  %v1737_v62 = vpop.permute.xlu0 %427  ;;  %v350_v30 = vmul.f32 %v1700_v39, %v327_v60  ;;  %v351_v31 = vmul.f32 %v1702_v40, %v327_v60 }
  0x92   : > { %904 = vperm.xlu1 %1546, %v866_v59  }
  0x93   : > { %909 = vperm.xlu2 %1545, %v867_v61   ;;  %v1739_v63 = vpop.permute.xlu2 %423 }
  0x94   : > { %v460_v61 = vmul.f32 %v1811_v49, %v1739_v63 }
  0x99   : > { %v362_v3 = vpop.permute.xlu1 %361  ;;  %1022 = vperm.xlu0 %1544, %v992_v0   ;;  %v1750_v4 = vpop.permute.xlu0 %447  ;;  %v461_v0 = vmul.f32 %v1813_v50, %v1739_v63  ;;  %v993_v63 = vld [vmem:[%s2235_s5 + $0x20] sm:$0xff] }
  0x9a   : > { %v394_v7 = vmul.f32 %v1693_v36, %v362_v3  ;;  %v395_v8 = vmul.f32 %v1695_v37, %v362_v3  ;;  %919 = vperm.xlu1 %1546, %v869_v1  }
  0x9b   : > { %924 = vperm.xlu2 %1545, %v870_v2   ;;  %v1756_v9 = vpop.permute.xlu2 %435 }
  0x9c   : > { %v410_v10 = vadd.f32 %v394_v7, %v340_v5  ;;  %v411_v11 = vadd.f32 %v395_v8, %v341_v6  ;;  %v1004_v8 = vld [vmem:[%s2235_s5 + $0x78] sm:$0xff] }
  0xa1   : > { %v370_v16 = vpop.permute.xlu1 %369  ;;  %1037 = vperm.xlu0 %1544, %v995_v12   ;;  %v994_v12 = vld [vmem:[%s2235_s5 + $0x28] sm:$0xff] }
  0xa2   : > { %v398_v19 = vmul.f32 %v1693_v36, %v370_v16  ;;  %v399_v20 = vmul.f32 %v1695_v37, %v370_v16  ;;  %934 = vperm.xlu1 %1546, %v872_v13   ;;  %v1773_v21 = vpop.permute.xlu0 %497  ;;  %v392_v16 = vmul.f32 %v1693_v36, %v1689_v32 }
  0xa3   : > { %939 = vperm.xlu2 %1545, %v873_v14   ;;  %v1775_v22 = vpop.permute.xlu2 %443 }
  0xa4   : > { %v1777_v23 = vadd.f32 %v398_v19, %v344_v17  ;;  %v1779_v26 = vadd.f32 %v399_v20, %v345_v18  ;;  %v393_v17 = vmul.f32 %v1695_v37, %v1689_v32  ;;  %v1215_v32 = vld [vmem:[%s2236_s6 + $0x10] sm:$0xff] }
  0xa9   : > { %v382_v29 = vpop.permute.xlu1 %381  ;;  %1052 = vperm.xlu0 %1544, %v998_v27   ;;  %v524_v27 = vperm.slane %v1676_v25, 3 }
  0xaa   : > { %v404_v33 = vmul.f32 %v1693_v36, %v382_v29  ;;  %v405_v34 = vmul.f32 %v1695_v37, %v382_v29  ;;  %949 = vperm.xlu1 %1546, %v875_v15   ;;  %v1794_v35 = vpop.permute.xlu0 %517  ;;  %v525_v15 = vperm.slane %v1676_v25, 7  ;;  %v463_v29 = vmul.f32 %v1813_v50, %v1737_v62  ;;  %v997_v25 = vld [vmem:[%s2235_s5 + $0x40] sm:$0xff] }
  0xab   : > { %954 = vperm.xlu2 %1545, %v876_v28   ;;  %v462_v28 = vmul.f32 %v1811_v49, %v1737_v62  ;;  %v1867_v44 = vperm.slane %v524_v27, 3 }
  0xac   : > { %v1796_v38 = vadd.f32 %v404_v33, %v350_v30  ;;  %v1798_v41 = vadd.f32 %v405_v34, %v351_v31  ;;  %v494_v42 = vpop.permute.xlu2 %493  ;;  %v996_v33 = vld [vmem:[%s2235_s5 + $0x38] sm:$0xff] }
  0xb1   : > { %1067 = vperm.xlu0 %1544, %v1001_v45   ;;  %v1869_v45 = vperm.slane %v525_v15, 3 }
  0xb2   : > { %1012 = vperm.xlu1 %1546, %v990_v47   ;;  %v432_v51 = vpop.permute.xlu1 %431  ;;  %v530_v47 = vmul.f32 %v1867_v44, %v494_v42 }
  0xb3   : > { %v464_v58 = vmul.f32 %v1811_v49, %v432_v51  ;;  %v465_v59 = vmul.f32 %v1813_v50, %v432_v51  ;;  %1017 = vperm.xlu2 %1545, %v991_v48   ;;  %v292_v60 = vpop.permute.xlu0 %291  ;;  %v531_v48 = vmul.f32 %v1869_v45, %v494_v42  ;;  %v999_v42 = vld [vmem:[%s2235_s5 + $0x50] sm:$0xff] }
  0xb4   : > { %v336_v1 = vmul.f32 %v1700_v39, %v292_v60  ;;  %v337_v2 = vmul.f32 %v1702_v40, %v292_v60  ;;  %v1827_v3 = vpop.permute.xlu2 %505 }
  0xb5   : > { %v1829_v5 = vadd.f32 %v464_v58, %v410_v10  ;;  %v1831_v24 = vadd.f32 %v465_v59, %v411_v11  ;;  %v1218_v59 = vld [vmem:[%s2236_s6 + $0x28] sm:$0xff] }
  0xb6   : > { %v406_v6 = vadd.f32 %v390_v54, %v336_v1  ;;  %v407_v7 = vadd.f32 %v391_v55, %v337_v2  ;;  %v532_v54 = vmul.f32 %v1867_v44, %v1773_v21  ;;  %v533_v55 = vmul.f32 %v1869_v45, %v1773_v21 }
  0xb8   : > { %v476_v13 = vadd.f32 %v460_v61, %v406_v6  ;;  %v477_v14 = vadd.f32 %v461_v0, %v407_v7  ;;  %v1000_v0 = vld [vmem:[%s2235_s5 + $0x58] sm:$0xff] }
  0xb9   : > { %1082 = vperm.xlu0 %1544, %v1004_v8  }
  0xba   : > { %1027 = vperm.xlu1 %1546, %v993_v63   ;;  %v1842_v10 = vpop.permute.xlu1 %439  ;;  %v546_v60 = vadd.f32 %v530_v47, %v476_v13  ;;  %v547_v61 = vadd.f32 %v531_v48, %v477_v14  ;;  %v1214_v47 = vld [vmem:[%s2236_s6 + $0x8] sm:$0xff]  ;;  %v536_v48 = vmul.f32 %v1867_v44, %v1827_v3 }
  0xbb   : > { %1032 = vperm.xlu2 %1545, %v994_v12   ;;  %v297_v11 = vpop.permute.xlu0 %296 }
  0xbc   : > { %v338_v18 = vmul.f32 %v1700_v39, %v297_v11  ;;  %v339_v19 = vmul.f32 %v1702_v40, %v297_v11  ;;  %v1850_v20 = vpop.permute.xlu2 %513  ;;  %v1221_v11 = vld [vmem:[%s2236_s6 + $0x40] sm:$0xff] }
  0xbe   : > { %v408_v30 = vadd.f32 %v392_v16, %v338_v18  ;;  %v409_v31 = vadd.f32 %v393_v17, %v339_v19  ;;  %v1002_v18 = vld [vmem:[%s2235_s5 + $0x68] sm:$0xff]  ;;  %v1003_v19 = vld [vmem:[%s2235_s5 + $0x70] sm:$0xff] }
  0xc0   : > { %v478_v34 = vadd.f32 %v462_v28, %v408_v30  ;;  %v479_v43 = vadd.f32 %v463_v29, %v409_v31 }
  0xc1   : > { %1241 = vperm.xlu0 %1544, %v1215_v32  }
  0xc2   : > { %1042 = vperm.xlu1 %1546, %v996_v33   ;;  %v1871_v62 = vpop.permute.xlu1 %451  ;;  %v548_v21 = vadd.f32 %v532_v54, %v478_v34  ;;  %v549_v6 = vadd.f32 %v533_v55, %v479_v43  ;;  %v1224_v33 = vld [vmem:[%s2236_s6 + $0x58] sm:$0xff]  ;;  %v466_v34 = vmul.f32 %v1811_v49, %v1756_v9  ;;  %v467_v43 = vmul.f32 %v1813_v50, %v1756_v9 }
  0xc3   : > { %1047 = vperm.xlu2 %1545, %v997_v25   ;;  %v1875_v51 = vpop.permute.xlu0 %321  ;;  %v1213_v25 = vld [vmem:[%s2236_s6] sm:$0xff]  ;;  %v537_v54 = vmul.f32 %v1869_v45, %v1827_v3  ;;  %v1227_v3 = vld [vmem:[%s2236_s6 + $0x70] sm:$0xff] }
  0xc5   : > { %v573_v58 = vpop.permute.xlu2 %572 }
  0xc6   : > { %v610_v1 = vadd.f32 %v573_v58, %v546_v60  ;;  %v611_v2 = vadd.f32 %v573_v58, %v547_v61  ;;  %v482_v58 = vadd.f32 %v466_v34, %v1718_v52  ;;  %v470_v60 = vmul.f32 %v1811_v49, %v1775_v22  ;;  %v1220_v34 = vld [vmem:[%s2236_s6 + $0x38] sm:$0xff] }
  0xc7   : > { %v471_v61 = vmul.f32 %v1813_v50, %v1775_v22  ;;  %v469_v52 = vmul.f32 %v1813_v50, %v1842_v10  ;;  %v1216_v22 = vld [vmem:[%s2236_s6 + $0x18] sm:$0xff] }
  0xc8   : > { %v642_v13 = vmul.f32 0.2, %v610_v1  ;;  %v643_v14 = vmul.f32 0.2, %v611_v2  ;;  %vm626_vm0 = vcmp.ge.f32.partialorder %v610_v1, 0.0  ;;  %vm627_vm1 = vcmp.ge.f32.partialorder %v611_v2, 0.0 }
  0xc9   : > { %1256 = vperm.xlu0 %1544, %v1218_v59   ;;  %v483_v59 = vadd.f32 %v467_v43, %v1720_v53 }
  0xca   : > { %1057 = vperm.xlu1 %1546, %v999_v42   ;;  %v658_v27 = vsel %vm626_vm0, %v610_v1, %v642_v13  ;;  %v659_v28 = vsel %vm627_vm1, %v611_v2, %v643_v14  ;;  %v552_v42 = vadd.f32 %v536_v48, %v482_v58  ;;  %v468_v1 = vmul.f32 %v1811_v49, %v1842_v10  ;;  %v1217_v10 = vld [vmem:[%s2236_s6 + $0x20] sm:$0xff] }
  0xcb   : > { %1062 = vperm.xlu2 %1545, %v1000_v0   ;;  %v502_v7 = vpop.permute.xlu1 %501  ;;  %v578_v8 = vpop.permute.xlu0 %577  ;;  %v553_v0 = vadd.f32 %v537_v54, %v483_v59  ;;  %v472_v13 = vmul.f32 %v1811_v49, %v1750_v4  ;;  %v540_v14 = vmul.f32 %v1867_v44, %v1850_v20  ;;  %v542_v59 = vmul.f32 %v1867_v44, %v1794_v35 }
  0xcc   : > { %v612_v63 = vadd.f32 %v578_v8, %v548_v21  ;;  %v613_v12 = vadd.f32 %v578_v8, %v549_v6  ;;  %v534_v53 = vmul.f32 %v1867_v44, %v502_v7  ;;  %v535_v2 = vmul.f32 %v1869_v45, %v502_v7 }
  0xcd   : > { %v588_v9 = vpop.permute.xlu2 %587  ;;  %v348_v21 = vmul.f32 %v1700_v39, %v1875_v51  ;;  %v349_v6 = vmul.f32 %v1702_v40, %v1875_v51  ;;  %v403_v7 = vmul.f32 %v1695_v37, %v1712_v46  ;;  %v473_v39 = vmul.f32 %v1813_v50, %v1750_v4 }
  0xce   : > { %v644_v16 = vmul.f32 0.2, %v612_v63  ;;  %v645_v17 = vmul.f32 0.2, %v613_v12  ;;  %vm628_vm2 = vcmp.ge.f32.partialorder %v612_v63, 0.0  ;;  %vm629_vm3 = vcmp.ge.f32.partialorder %v613_v12, 0.0 }
  0xcf   : > { %v616_v8 = vadd.f32 %v588_v9, %v552_v42  ;;  %v486_v40 = vadd.f32 %v470_v60, %v1724_v56  ;;  %v487_v51 = vadd.f32 %v471_v61, %v1726_v57  ;;  %v484_v37 = vadd.f32 %v468_v1, %v1777_v23 }
  0xd0   : > { %v660_v15 = vsel %vm628_vm2, %v612_v63, %v644_v16  ;;  %v661_v29 = vsel %vm629_vm3, %v613_v12, %v645_v17  ;;  %v617_v63 = vadd.f32 %v588_v9, %v553_v0  ;;  %v402_v12 = vmul.f32 %v1693_v36, %v1712_v46 }
  0xd1   : > { %1271 = vperm.xlu0 %1544, %v1221_v11   ;;  %v1899_v30 = vpack.c.bf16 %v660_v15, %v658_v27  ;;  %v1901_v31 = vpack.c.bf16 %v661_v29, %v659_v28  ;;  %v541_v36 = vmul.f32 %v1869_v45, %v1850_v20  ;;  %v485_v46 = vadd.f32 %v469_v52, %v1779_v26 }
  0xd2   : > { %1072 = vperm.xlu1 %1546, %v1002_v18   ;;  %v550_v11 = vadd.f32 %v534_v53, %v1829_v5  ;;  %v551_v4 = vadd.f32 %v535_v2, %v1831_v24  ;;  %v418_v16 = vadd.f32 %v402_v12, %v348_v21  ;;  %v419_v56 = vadd.f32 %v403_v7, %v349_v6  ;;  %v1219_v5 = vld [vmem:[%s2236_s6 + $0x30] sm:$0xff] }
  0xd3   : > { %1077 = vperm.xlu2 %1545, %v1003_v19   ;;  %v510_v32 = vpop.permute.xlu1 %509  ;;  %v648_v17 = vmul.f32 0.2, %v616_v8  ;;  %v649_v57 = vmul.f32 0.2, %v617_v63  ;;  %vm632_vm4 = vcmp.ge.f32.partialorder %v616_v8, 0.0  ;;  %vm633_vm5 = vcmp.ge.f32.partialorder %v617_v63, 0.0 }
  0xd4   : > { %v538_v20 = vmul.f32 %v1867_v44, %v510_v32  ;;  %v539_v23 = vmul.f32 %v1869_v45, %v510_v32  ;;  %v556_v26 = vadd.f32 %v540_v14, %v486_v40  ;;  %v557_v28 = vadd.f32 %v541_v36, %v487_v51 }
  0xd5   : > { %v598_v15 = vpop.permute.xlu2 %597  ;;  %v664_v43 = vsel %vm632_vm4, %v616_v8, %v648_v17  ;;  %v543_v9 = vmul.f32 %v1869_v45, %v1794_v35  ;;  %v475_v1 = vmul.f32 %v1813_v50, %v1871_v62  ;;  %vm738_vm0 = vcmask 523264  }
  0xd6   : > { %v620_v32 = vadd.f32 %v598_v15, %v556_v26  ;;  %v621_v48 = vadd.f32 %v598_v15, %v557_v28  ;;  %v554_v42 = vadd.f32 %v538_v20, %v484_v37  ;;  %v555_v0 = vadd.f32 %v539_v23, %v485_v46  ;;  %v1228_v28 = vld [vmem:[%s2236_s6 + $0x78] sm:$0xff] }
  0xd7   : > { %v491_v7 = vadd.f32 %v475_v1, %v1798_v41 }
  0xd8   : > { %v652_v21 = vmul.f32 0.2, %v620_v32  ;;  %v653_v35 = vmul.f32 0.2, %v621_v48  ;;  %vm636_vm8 = vcmp.ge.f32.partialorder %v620_v32, 0.0  ;;  %vm637_vm9 = vcmp.ge.f32.partialorder %v621_v48, 0.0 }
  0xd9   : > { %1286 = vperm.xlu0 %1544, %v1224_v33   ;;  %v488_v33 = vadd.f32 %v472_v13, %v418_v16 }
  0xda   : > { %1231 = vperm.xlu1 %1546, %v1213_v25   ;;  %v489_v25 = vadd.f32 %v473_v39, %v419_v56  ;;  %v669_v51 = vsel %vm637_vm9, %v621_v48, %v653_v35  ;;  %v1225_v56 = vld [vmem:[%s2236_s6 + $0x60] sm:$0xff]  ;;  %v1508_v48 = vld [vmem:[%s2233_s3 + $0x18] sm:$0xff] }
  0xdb   : > { %1236 = vperm.xlu2 %1545, %v1214_v47   ;;  %v1920_v55 = vpop.permute.xlu1 %521  ;;  %v665_v47 = vsel %vm633_vm5, %v617_v63, %v649_v57  ;;  %v558_v52 = vadd.f32 %v542_v59, %v488_v33  ;;  %v1511_v33 = vld [vmem:[%s2233_s3 + $0x30] sm:$0xff] }
  0xdc   : > { %v559_v53 = vadd.f32 %v543_v9, %v489_v25  ;;  %v544_v63 = vmul.f32 %v1867_v44, %v1920_v55  ;;  %v1223_v44 = vld [vmem:[%s2236_s6 + $0x50] sm:$0xff] }
  0xe1   : > { %1301 = vperm.xlu0 %1544, %v1227_v3   ;;  %v474_v3 = vmul.f32 %v1811_v49, %v1871_v62  ;;  %v1222_v49 = vld [vmem:[%s2236_s6 + $0x48] sm:$0xff] }
  0xe2   : > { %1246 = vperm.xlu1 %1546, %v1216_v22   ;;  %v603_v22 = vpop.permute.xlu0 %602 }
  0xe3   : > { %1251 = vperm.xlu2 %1545, %v1217_v10   ;;  %v545_v10 = vmul.f32 %v1869_v45, %v1920_v55  ;;  %v490_v12 = vadd.f32 %v474_v3, %v1796_v38  ;;  %v622_v13 = vadd.f32 %v603_v22, %v558_v52  ;;  %v623_v39 = vadd.f32 %v603_v22, %v559_v53 }
  0xe4   : > { %v583_v18 = vpop.permute.xlu1 %582  ;;  %v668_v55 = vsel %vm636_vm8, %v620_v32, %v652_v21 }
  0xe5   : > { %v614_v19 = vadd.f32 %v583_v18, %v550_v11  ;;  %v615_v27 = vadd.f32 %v583_v18, %v551_v4  ;;  %v560_v37 = vadd.f32 %v544_v63, %v490_v12  ;;  %v561_v46 = vadd.f32 %v545_v10, %v491_v7  ;;  %v1226_v18 = vld [vmem:[%s2236_s6 + $0x68] sm:$0xff] }
  0xe6   : > { %v654_v38 = vmul.f32 0.2, %v622_v13  ;;  %v655_v4 = vmul.f32 0.2, %v623_v39  ;;  %vm638_vm12 = vcmp.ge.f32.partialorder %v622_v13, 0.0  ;;  %vm639_vm13 = vcmp.ge.f32.partialorder %v623_v39, 0.0 }
  0xe7   : > { %v646_v24 = vmul.f32 0.2, %v614_v19  ;;  %v647_v29 = vmul.f32 0.2, %v615_v27  ;;  %vm630_vm6 = vcmp.ge.f32.partialorder %v614_v19, 0.0  ;;  %vm631_vm7 = vcmp.ge.f32.partialorder %v615_v27, 0.0 }
  0xe8   : > { %v671_v20 = vsel %vm639_vm13, %v623_v39, %v655_v4 }
  0xe9   : > { %v662_v54 = vsel %vm630_vm6, %v614_v19, %v646_v24  ;;  %v663_v58 = vsel %vm631_vm7, %v615_v27, %v647_v29  ;;  %v670_v19 = vsel %vm638_vm12, %v622_v13, %v654_v38  ;;  %v1509_v24 = vld [vmem:[%s2233_s3 + $0x20] sm:$0xff]  ;;  %v1506_v29 = vld [vmem:[%s2233_s3 + $0x8] sm:$0xff] }
  0xea   : > { %1261 = vperm.xlu1 %1546, %v1219_v5   ;;  %v1977_v60 = vpack.c.bf16 %v664_v43, %v662_v54  ;;  %v1979_v61 = vpack.c.bf16 %v665_v47, %v663_v58  ;;  %v1505_v5 = vld [vmem:[%s2233_s3] sm:$0xff]  ;;  %v885_v25 = vpop.permute.xlu0 %884  ;;  %v1512_v54 = vld [vmem:[%s2233_s3 + $0x38] sm:$0xff] }
  0xeb   : > { %1266 = vperm.xlu2 %1545, %v1220_v34   ;;  %v880_v34 = vpop.permute.xlu2 %879 }
  0xec   : > { %v593_v2 = vpop.permute.xlu1 %592 }
  0xed   : > { %v618_v6 = vadd.f32 %v593_v2, %v554_v42  ;;  %v619_v8 = vadd.f32 %v593_v2, %v555_v0 }
  0xef   : > { %v650_v50 = vmul.f32 0.2, %v618_v6  ;;  %v651_v62 = vmul.f32 0.2, %v619_v8  ;;  %vm634_vm10 = vcmp.ge.f32.partialorder %v618_v6, 0.0  ;;  %vm635_vm11 = vcmp.ge.f32.partialorder %v619_v8, 0.0 }
  0xf1   : > { %v666_v45 = vsel %vm634_vm10, %v618_v6, %v650_v50  ;;  %v667_v40 = vsel %vm635_vm11, %v619_v8, %v651_v62 }
  0xf2   : > { %1276 = vperm.xlu1 %1546, %v1222_v49   ;;  %v694_v14 = vpack.c.bf16 %v668_v55, %v666_v45  ;;  %v695_v36 = vpack.c.bf16 %v669_v51, %v667_v40  ;;  %v2046_v47 = vpop.permute.xlu0 %899 }
  0xf3   : > { %1281 = vperm.xlu2 %1545, %v1223_v44   ;;  %v2048_v32 = vpop.permute.xlu2 %894 }
  0xf4   : > { %v608_v11 = vpop.permute.xlu1 %607 }
  0xf5   : > { %v624_v41 = vadd.f32 %v608_v11, %v560_v37  ;;  %v625_v16 = vadd.f32 %v608_v11, %v561_v46 }
  0xf7   : > { %v656_v17 = vmul.f32 0.2, %v624_v41  ;;  %v657_v57 = vmul.f32 0.2, %v625_v16  ;;  %vm640_vm14 = vcmp.ge.f32.partialorder %v624_v41, 0.0  ;;  %vm641_vm15 = vcmp.ge.f32.partialorder %v625_v16, 0.0 }
  0xf9   : > { %v672_v27 = vsel %vm640_vm14, %v624_v41, %v656_v17  ;;  %v673_v23 = vsel %vm641_vm15, %v625_v16, %v657_v57 }
  0xfa   : > { %1291 = vperm.xlu1 %1546, %v1225_v56   ;;  %v696_v15 = vpack.c.bf16 %v672_v27, %v670_v19  ;;  %v697_v26 = vpack.c.bf16 %v673_v23, %v671_v20  ;;  %v2062_v59 = vpop.permute.xlu0 %914 }
  0xfb   : > { %1296 = vperm.xlu2 %1545, %v1226_v18   ;;  %v2064_v9 = vpop.permute.xlu2 %909 }
  0xfc   : > { %767 = vmatpush.bf16.msra.mxu0 %v696_v15  ;;  %1513 = vmatpush.bf16.msra.mxu2 %v696_v15  ;;  %v2044_v43 = vpop.permute.xlu1 %889 }
  0xfd   : > { %816 = vmatpush.bf16.msra.mxu1 %v697_v26  ;;  %1517 = vmatpush.bf16.msra.mxu3 %v697_v26 }
 0x100   : > { %768 = vmatpush.bf16.msra.mxu0 %v694_v14  ;;  %1514 = vmatpush.bf16.msra.mxu2 %v694_v14 }
 0x101   : > { %817 = vmatpush.bf16.msra.mxu1 %v695_v36  ;;  %1518 = vmatpush.bf16.msra.mxu3 %v695_v36 }
 0x102   : > { %1306 = vperm.xlu1 %1546, %v1228_v28  }
 0x103   : > { %v925_v42 = vpop.permute.xlu2 %924 }
 0x104   : > { %769 = vmatpush.bf16.msra.mxu0 %v1977_v60  ;;  %1515 = vmatpush.bf16.msra.mxu2 %v1977_v60  ;;  %v2056_v58 = vpop.permute.xlu1 %904 }
 0x105   : > { %818 = vmatpush.bf16.msra.mxu1 %v1979_v61  ;;  %1519 = vmatpush.bf16.msra.mxu3 %v1979_v61  ;;  %v2066_v61 = vpop.permute.xlu0 %929 }
 0x108   : > { %770 = vmatpush.bf16.msra.mxu0 %v1899_v30  ;;  %1516 = vmatpush.bf16.msra.mxu2 %v1899_v30  ;;  %v1510_v30 = vld [vmem:[%s2233_s3 + $0x28] sm:$0xff] }
 0x109   : > { %819 = vmatpush.bf16.msra.mxu1 %v1901_v31  ;;  %1520 = vmatpush.bf16.msra.mxu3 %v1901_v31  ;;  %v1507_v31 = vld [vmem:[%s2233_s3 + $0x10] sm:$0xff] }
 0x10b   : > { %1487 = vmatmul.msk.bf16.vlgmr.msra.gmra.mxu0 %vm738_vm0, %v1505_v5  ;;  %1491 = vmatmul.msk.bf16.vlgmr.msra.gmra.mxu2 %vm738_vm0, %v1509_v24  ;;  %v2072_v1 = vpop.permute.xlu2 %939 }
 0x10c   : > { %1495 = vmatmul.msk.bf16.vlgmr.msra.gmra.mxu1 %vm738_vm0, %v1505_v5  ;;  %1499 = vmatmul.msk.bf16.vlgmr.msra.gmra.mxu3 %vm738_vm0, %v1509_v24  ;;  %v920_v60 = vpop.permute.xlu1 %919 }
 0x10d   : > { %v2070_v3 = vpop.permute.xlu0 %944 }
 0x113   : > { %v2076_v2 = vpop.permute.xlu2 %954 }
 0x114   : > { %v2068_v0 = vpop.permute.xlu1 %934 }
 0x115   : > { %v1008_v53 = vpop.permute.xlu0 %1007 }
 0x11b   : > { %1488 = vmatmul.msk.bf16.gmra.mxu0 %vm738_vm0, %v1506_v29  ;;  %1492 = vmatmul.msk.bf16.gmra.mxu2 %vm738_vm0, %v1510_v30  ;;  %v2080_v35 = vpop.permute.xlu2 %1017 }
 0x11c   : > { %1496 = vmatmul.msk.bf16.gmra.mxu1 %vm738_vm0, %v1506_v29  ;;  %1500 = vmatmul.msk.bf16.gmra.mxu3 %vm738_vm0, %v1510_v30  ;;  %v2074_v52 = vpop.permute.xlu1 %949 }
 0x11d   : > { %v2078_v21 = vpop.permute.xlu0 %1022 }
 0x123   : > { %v2086_v63 = vpop.permute.xlu2 %1032 }
 0x124   : > { %v1013_v22 = vpop.permute.xlu1 %1012 }
 0x125   : > { %v2084_v8 = vpop.permute.xlu0 %1037 }
 0x12b   : > { %1489 = vmatmul.msk.bf16.gmra.mxu0 %vm738_vm0, %v1507_v31  ;;  %1493 = vmatmul.msk.bf16.gmra.mxu2 %vm738_vm0, %v1511_v33  ;;  %v1048_v50 = vpop.permute.xlu2 %1047 }
 0x12c   : > { %1497 = vmatmul.msk.bf16.gmra.mxu1 %vm738_vm0, %v1507_v31  ;;  %1501 = vmatmul.msk.bf16.gmra.mxu3 %vm738_vm0, %v1511_v33  ;;  %v2082_v6 = vpop.permute.xlu1 %1027 }
 0x12d   : > { %v2090_v49 = vpop.permute.xlu0 %1052 }
 0x133   : > { %v2096_v7 = vpop.permute.xlu2 %1062 }
 0x134   : > { %v2088_v10 = vpop.permute.xlu1 %1042 }
 0x135   : > { %v2094_v12 = vpop.permute.xlu0 %1067 }
 0x13b   : > { %1490 = vmatmul.msk.bf16.gmra.mxu0 %vm738_vm0, %v1508_v48  ;;  %1494 = vmatmul.msk.bf16.gmra.mxu2 %vm738_vm0, %v1512_v54  ;;  %v2102_v40 = vpop.permute.xlu2 %1077 }
 0x13c   : > { %1498 = vmatmul.msk.bf16.gmra.mxu1 %vm738_vm0, %v1508_v48  ;;  %1502 = vmatmul.msk.bf16.gmra.mxu3 %vm738_vm0, %v1512_v54  ;;  %v2092_v62 = vpop.permute.xlu1 %1057 }
 0x13d   : > { %v2100_v45 = vpop.permute.xlu0 %1082 }
 0x13e   : > { %2239 = vst [vmem:[#allocation2_spill] sm:$0xff] %v2100_v45 }
 0x143   : > { %v1237_v41 = vpop.permute.xlu2 %1236 }
 0x144   : > { %v2098_v44 = vpop.permute.xlu1 %1072 }
 0x145   : > { %v2106_v38 = vpop.permute.xlu0 %1241 }
 0x14c   : > { %v2104_v37 = vpop.permute.xlu1 %1231 }
 0x14d   : > { %v2110_v54 = vpop.permute.xlu0 %1256 }
 0x154   : > { %v2108_v15 = vpop.permute.xlu1 %1246 }
 0x188   : > { %v772_v13 = vpop.f32.mrf.mxu0 }
 0x189   : > { %v821_v39 = vpop.f32.mrf.mxu1  ;;  %v957_v56 = vmul.f32 %v880_v34, %v772_v13  ;;  %v2112_v13 = vpop.permute.xlu2 %1251 }
 0x18a   : > { %v958_v19 = vmul.f32 %v880_v34, %v821_v39 }
 0x18b   : > { %v1085_v18 = vadd.f32 %v1008_v53, %v957_v56 }
 0x18c   : > { %v1086_v31 = vadd.f32 %v1008_v53, %v958_v19 }
 0x18d   : > { %v1149_v30 = vmul.f32 0.2, %v1085_v18  ;;  %vm1117_vm1 = vcmp.ge.f32.partialorder %v1085_v18, 0.0 }
 0x18e   : > { %v792_v55 = vpop.f32.mrf.mxu2  ;;  %vm1118_vm4 = vcmp.ge.f32.partialorder %v1086_v31, 0.0 }
 0x18f   : > { %v841_v51 = vpop.f32.mrf.mxu3  ;;  %v973_v27 = vmul.f32 %v920_v60, %v792_v55 }
 0x190   : > { %v774_v14 = vpop.f32.mrf.mxu0  ;;  %v974_v20 = vmul.f32 %v920_v60, %v841_v51  ;;  %v1181_v51 = vsel %vm1117_vm1, %v1085_v18, %v1149_v30 }
 0x191   : > { %v823_v36 = vpop.f32.mrf.mxu1  ;;  %v959_v17 = vmul.f32 %v885_v25, %v774_v14  ;;  %v1101_v33 = vadd.f32 %v1048_v50, %v973_v27  ;;  %v1150_v14 = vmul.f32 0.2, %v1086_v31  ;;  %v2128_v45 = vpop.permute.xlu2 %1266 }
 0x192   : > { %v960_v57 = vmul.f32 %v885_v25, %v823_v36  ;;  %v1102_v48 = vadd.f32 %v1048_v50, %v974_v20 }
 0x193   : > { %v1087_v28 = vadd.f32 %v1013_v22, %v959_v17  ;;  %v1165_v53 = vmul.f32 0.2, %v1101_v33  ;;  %vm1133_vm5 = vcmp.ge.f32.partialorder %v1101_v33, 0.0  ;;  %v1182_v20 = vsel %vm1118_vm4, %v1086_v31, %v1150_v14 }
 0x194   : > { %v1088_v5 = vadd.f32 %v1013_v22, %v960_v57  ;;  %v1166_v36 = vmul.f32 0.2, %v1102_v48  ;;  %vm1134_vm6 = vcmp.ge.f32.partialorder %v1102_v48, 0.0 }
 0x195   : > { %v1151_v34 = vmul.f32 0.2, %v1087_v28  ;;  %vm1119_vm2 = vcmp.ge.f32.partialorder %v1087_v28, 0.0  ;;  %v1197_v30 = vsel %vm1133_vm5, %v1101_v33, %v1165_v53 }
 0x196   : > { %v794_v46 = vpop.f32.mrf.mxu2  ;;  %v1152_v60 = vmul.f32 0.2, %v1088_v5  ;;  %vm1120_vm3 = vcmp.ge.f32.partialorder %v1088_v5, 0.0 }
 0x197   : > { %v843_v11 = vpop.f32.mrf.mxu3  ;;  %v975_v39 = vmul.f32 %v925_v42, %v794_v46 }
 0x198   : > { %v777_v4 = vpop.f32.mrf.mxu0  ;;  %v976_v55 = vmul.f32 %v925_v42, %v843_v11  ;;  %v1184_v57 = vsel %vm1120_vm3, %v1088_v5, %v1152_v60 }
 0x199   : > { %v826_v16 = vpop.f32.mrf.mxu1  ;;  %v961_v25 = vmul.f32 %v2044_v43, %v777_v4  ;;  %v1183_v4 = vsel %vm1119_vm2, %v1087_v28, %v1151_v34  ;;  %v1103_v42 = vadd.f32 %v2090_v49, %v975_v39  ;;  %v1312_v34 = vmul.f32 %v1237_v41, %v1184_v57 }
 0x19a   : > { %v962_v22 = vmul.f32 %v2044_v43, %v826_v16  ;;  %v1104_v46 = vadd.f32 %v2090_v49, %v976_v55  ;;  %v2121_v43 = vpop.permute.xlu1 %1261  ;;  %v1309_v16 = vmul.f32 %v2104_v37, %v1181_v51  ;;  %v1311_v5 = vmul.f32 %v1237_v41, %v1183_v4  ;;  %v1272_v51 = vpop.permute.xlu0 %1271 }
 0x19b   : > { %v1089_v56 = vadd.f32 %v2080_v35, %v961_v25  ;;  %v1198_v25 = vsel %vm1134_vm6, %v1102_v48, %v1166_v36  ;;  %vm1135_vm7 = vcmp.ge.f32.partialorder %v1103_v42, 0.0  ;;  %v1167_v39 = vmul.f32 0.2, %v1103_v42 }
 0x19c   : > { %v1090_v18 = vadd.f32 %v2080_v35, %v962_v22  ;;  %v1168_v55 = vmul.f32 0.2, %v1104_v46  ;;  %vm1136_vm9 = vcmp.ge.f32.partialorder %v1104_v46, 0.0  ;;  %v2133_v33 = vmul.f32 %v1272_v51, %v1197_v30 }
 0x19d   : > { %v1153_v60 = vmul.f32 0.2, %v1089_v56  ;;  %vm1121_vm8 = vcmp.ge.f32.partialorder %v1089_v56, 0.0  ;;  %v1341_v36 = vadd.f32 %v1311_v5, %v1309_v16 }
 0x19e   : > { %v797_v23 = vpop.f32.mrf.mxu2  ;;  %v1154_v35 = vmul.f32 0.2, %v1090_v18  ;;  %vm1122_vm10 = vcmp.ge.f32.partialorder %v1090_v18, 0.0 }
 0x19f   : > { %v846_v26 = vpop.f32.mrf.mxu3  ;;  %v977_v19 = vmul.f32 %v2066_v61, %v797_v23  ;;  %v1185_v48 = vsel %vm1121_vm8, %v1089_v56, %v1153_v60 }
 0x1a0   : > { %v779_v24 = vpop.f32.mrf.mxu0  ;;  %v978_v31 = vmul.f32 %v2066_v61, %v846_v26  ;;  %v1199_v61 = vsel %vm1135_vm7, %v1103_v42, %v1167_v39  ;;  %v1186_v57 = vsel %vm1122_vm10, %v1090_v18, %v1154_v35 }
 0x1a1   : > { %v828_v29 = vpop.f32.mrf.mxu1  ;;  %v963_v28 = vmul.f32 %v2048_v32, %v779_v24  ;;  %v1105_v23 = vadd.f32 %v2092_v62, %v977_v19  ;;  %v1310_v24 = vmul.f32 %v2104_v37, %v1182_v20  ;;  %v1200_v37 = vsel %vm1136_vm9, %v1104_v46, %v1168_v55 }
 0x1a2   : > { %v964_v49 = vmul.f32 %v2048_v32, %v828_v29  ;;  %v2136_v29 = vmul.f32 %v1272_v51, %v1198_v25  ;;  %v1106_v20 = vadd.f32 %v2092_v62, %v978_v31  ;;  %v1277_v25 = vpop.permute.xlu1 %1276  ;;  %v1314_v62 = vmul.f32 %v2106_v38, %v1186_v57  ;;  %v2162_v51 = vpop.permute.xlu2 %1281 }
 0x1a3   : > { %v1091_v32 = vadd.f32 %v2078_v21, %v963_v28  ;;  %v1362_v4 = vadd.f32 %v1312_v34, %v1310_v24  ;;  %v1169_v19 = vmul.f32 0.2, %v1105_v23  ;;  %vm1137_vm11 = vcmp.ge.f32.partialorder %v1105_v23, 0.0 }
 0x1a4   : > { %v1092_v22 = vadd.f32 %v2078_v21, %v964_v49  ;;  %v1313_v21 = vmul.f32 %v2106_v38, %v1185_v48  ;;  %v2150_v18 = vmul.f32 %v1277_v25, %v1199_v61  ;;  %v1170_v34 = vmul.f32 0.2, %v1106_v20 }
 0x1a5   : > { %vm1123_vm12 = vcmp.ge.f32.partialorder %v1091_v32, 0.0  ;;  %v1201_v5 = vsel %vm1137_vm11, %v1105_v23, %v1169_v19  ;;  %vm1138_vm14 = vcmp.ge.f32.partialorder %v1106_v20, 0.0 }
 0x1a6   : > { %v799_v50 = vpop.f32.mrf.mxu2  ;;  %v1156_v16 = vmul.f32 0.2, %v1092_v22  ;;  %vm1124_vm13 = vcmp.ge.f32.partialorder %v1092_v22, 0.0  ;;  %v1342_v49 = vadd.f32 %v1341_v36, %v1313_v21  ;;  %v2169_v24 = vmul.f32 %v2162_v51, %v1201_v5 }
 0x1a7   : > { %v2117_v17 = vpop.f32.mrf.mxu3  ;;  %v979_v28 = vmul.f32 %v2068_v0, %v799_v50 }
 0x1a8   : > { %v782_v11 = vpop.f32.mrf.mxu0  ;;  %v980_v39 = vmul.f32 %v2068_v0, %v2117_v17  ;;  %v1188_v38 = vsel %vm1124_vm13, %v1092_v22, %v1156_v16  ;;  %v2172_v17 = vsel %vm1138_vm14, %v1106_v20, %v1170_v34 }
 0x1a9   : > { %v831_v27 = vpop.f32.mrf.mxu1  ;;  %v965_v14 = vmul.f32 %v2046_v47, %v782_v11  ;;  %v1155_v11 = vmul.f32 0.2, %v1091_v32  ;;  %v1316_v61 = vmul.f32 %v2108_v15, %v1188_v38 }
 0x1aa   : > { %v966_v30 = vmul.f32 %v2046_v47, %v831_v27  ;;  %v2154_v27 = vmul.f32 %v1277_v25, %v1200_v37  ;;  %v1108_v37 = vadd.f32 %v2096_v7, %v980_v39 }
 0x1ab   : > { %v1093_v42 = vadd.f32 %v2082_v6, %v965_v14  ;;  %v1187_v50 = vsel %vm1123_vm12, %v1091_v32, %v1155_v11 }
 0x1ac   : > { %v1094_v60 = vadd.f32 %v2082_v6, %v966_v30  ;;  %v1363_v6 = vadd.f32 %v1362_v4, %v1314_v62  ;;  %v1315_v48 = vmul.f32 %v2108_v15, %v1187_v50  ;;  %vm1140_vm4 = vcmp.ge.f32.partialorder %v1108_v37, 0.0 }
 0x1ad   : > { %v1157_v35 = vmul.f32 0.2, %v1093_v42  ;;  %vm1125_vm15 = vcmp.ge.f32.partialorder %v1093_v42, 0.0 }
 0x1ae   : > { %v802_v41 = vpop.f32.mrf.mxu2  ;;  %v1158_v22 = vmul.f32 0.2, %v1094_v60  ;;  %vm1126_vm0 = vcmp.ge.f32.partialorder %v1094_v60, 0.0  ;;  %v1364_v5 = vadd.f32 %v1363_v6, %v1316_v61 }
 0x1af   : > { %v2140_v53 = vpop.f32.mrf.mxu3  ;;  %v981_v19 = vmul.f32 %v2072_v1, %v802_v41 }
 0x1b0   : > { %v784_v26 = vpop.f32.mrf.mxu0  ;;  %v1190_v21 = vsel %vm1126_vm0, %v1094_v60, %v1158_v22  ;;  %v982_v16 = vmul.f32 %v2072_v1, %v2140_v53 }
 0x1b1   : > { %v833_v56 = vpop.f32.mrf.mxu1  ;;  %v967_v46 = vmul.f32 %v2056_v58, %v784_v26  ;;  %v1189_v26 = vsel %vm1125_vm15, %v1093_v42, %v1157_v35  ;;  %v1343_v42 = vadd.f32 %v1342_v49, %v1315_v48 }
 0x1b2   : > { %v968_v47 = vmul.f32 %v2056_v58, %v833_v56  ;;  %v1107_v58 = vadd.f32 %v2096_v7, %v979_v28  ;;  %v1172_v7 = vmul.f32 0.2, %v1108_v37  ;;  %v1317_v25 = vmul.f32 %v2112_v13, %v1189_v26 }
 0x1b3   : > { %v1095_v23 = vadd.f32 %v2086_v63, %v967_v46  ;;  %v1109_v46 = vadd.f32 %v2094_v12, %v981_v19 }
 0x1b4   : > { %v1096_v32 = vadd.f32 %v2086_v63, %v968_v47  ;;  %vm1139_vm1 = vcmp.ge.f32.partialorder %v1107_v58, 0.0  ;;  %v1171_v56 = vmul.f32 0.2, %v1107_v58  ;;  %v1204_v38 = vsel %vm1140_vm4, %v1108_v37, %v1172_v7 }
 0x1b5   : > { %v1159_v57 = vmul.f32 0.2, %v1095_v23  ;;  %vm1127_vm2 = vcmp.ge.f32.partialorder %v1095_v23, 0.0  ;;  %v1344_v35 = vadd.f32 %v1343_v42, %v1317_v25  ;;  %vm1141_vm7 = vcmp.ge.f32.partialorder %v1109_v46, 0.0  ;;  %v1292_v42 = vpop.permute.xlu1 %1291 }
 0x1b6   : > { %v2160_v55 = vpop.f32.mrf.mxu2  ;;  %v1160_v20 = vmul.f32 0.2, %v1096_v32  ;;  %vm1128_vm3 = vcmp.ge.f32.partialorder %v1096_v32, 0.0  ;;  %v1203_v34 = vsel %vm1139_vm1, %v1107_v58, %v1171_v56  ;;  %v1173_v61 = vmul.f32 0.2, %v1109_v46 }
 0x1b7   : > { %v2166_v31 = vpop.f32.mrf.mxu3  ;;  %v1191_v28 = vsel %vm1127_vm2, %v1095_v23, %v1159_v57  ;;  %v983_v48 = vmul.f32 %v2070_v3, %v2160_v55  ;;  %v1330_v56 = vmul.f32 %v2162_v51, %v2172_v17  ;;  %v2240_v17 = vld [vmem:[#allocation2_spill] sm:$0xff]  ;;  %vm1386_vm1 = vcmask 1040384  }
 0x1b8   : > { %v787_v0 = vpop.f32.mrf.mxu0  ;;  %v1192_v62 = vsel %vm1128_vm3, %v1096_v32, %v1160_v20  ;;  %v1319_v1 = vmul.f32 %v2110_v54, %v1191_v28 }
 0x1b9   : > { %v969_v14 = vmul.f32 %v2064_v9, %v787_v0  ;;  %v836_v36 = vpop.f32.mrf.mxu1  ;;  %v1320_v23 = vmul.f32 %v2110_v54, %v1192_v62  ;;  %v1111_v19 = vadd.f32 %v2098_v44, %v983_v48 }
 0x1ba   : > { %v970_v4 = vmul.f32 %v2064_v9, %v836_v36 }
 0x1bb   : > { %v1097_v63 = vadd.f32 %v2084_v8, %v969_v14  ;;  %v1345_v14 = vadd.f32 %v1344_v35, %v1319_v1  ;;  %v1175_v51 = vmul.f32 0.2, %v1111_v19  ;;  %vm1143_vm11 = vcmp.ge.f32.partialorder %v1111_v19, 0.0 }
 0x1bc   : > { %v1098_v30 = vadd.f32 %v2084_v8, %v970_v4  ;;  %v1318_v8 = vmul.f32 %v2112_v13, %v1190_v21  ;;  %v1110_v13 = vadd.f32 %v2094_v12, %v982_v16  ;;  %v984_v12 = vmul.f32 %v2070_v3, %v2166_v31 }
 0x1bd   : > { %v1161_v15 = vmul.f32 0.2, %v1097_v63  ;;  %vm1129_vm5 = vcmp.ge.f32.partialorder %v1097_v63, 0.0  ;;  %v1205_v16 = vsel %vm1141_vm7, %v1109_v46, %v1173_v61 }
 0x1be   : > { %v1162_v11 = vmul.f32 0.2, %v1098_v30  ;;  %v807_v9 = vpop.f32.mrf.mxu2  ;;  %vm1130_vm6 = vcmp.ge.f32.partialorder %v1098_v30, 0.0  ;;  %v1365_v32 = vadd.f32 %v1364_v5, %v1318_v8  ;;  %v1112_v21 = vadd.f32 %v2098_v44, %v984_v12 }
 0x1bf   : > { %v856_v41 = vpop.f32.mrf.mxu3  ;;  %v1193_v60 = vsel %vm1129_vm5, %v1097_v63, %v1161_v15  ;;  %v985_v4 = vmul.f32 %v2074_v52, %v807_v9  ;;  %v1174_v28 = vmul.f32 0.2, %v1110_v13  ;;  %vm1142_vm10 = vcmp.ge.f32.partialorder %v1110_v13, 0.0 }
 0x1c0   : > { %v789_v47 = vpop.f32.mrf.mxu0  ;;  %v1194_v53 = vsel %vm1130_vm6, %v1098_v30, %v1162_v11  ;;  %v1321_v58 = vmul.f32 %v2121_v43, %v1193_v60  ;;  %v1366_v37 = vadd.f32 %v1365_v32, %v1320_v23  ;;  %v986_v55 = vmul.f32 %v2074_v52, %v856_v41  ;;  %v1287_v30 = vpop.permute.xlu0 %1286 }
 0x1c1   : > { %v971_v50 = vmul.f32 %v2062_v59, %v789_v47  ;;  %v838_v39 = vpop.f32.mrf.mxu1  ;;  %v1322_v22 = vmul.f32 %v2121_v43, %v1194_v53  ;;  %v1331_v52 = vmul.f32 %v1287_v30, %v1203_v34  ;;  %v1332_v11 = vmul.f32 %v1287_v30, %v1204_v38  ;;  %v1297_v53 = vpop.permute.xlu2 %1296 }
 0x1c2   : > { %v972_v49 = vmul.f32 %v2062_v59, %v838_v39  ;;  %v1346_v57 = vadd.f32 %v1345_v14, %v1321_v58  ;;  %v1113_v9 = vadd.f32 %v2102_v40, %v985_v4  ;;  %v1333_v5 = vmul.f32 %v1292_v42, %v1205_v16  ;;  %v1307_v14 = vpop.permute.xlu1 %1306 }
 0x1c3   : > { %v1099_v6 = vadd.f32 %v2088_v10, %v971_v50  ;;  %v1367_v20 = vadd.f32 %v1366_v37, %v1322_v22  ;;  %vm1144_vm12 = vcmp.ge.f32.partialorder %v1112_v21, 0.0  ;;  %v1206_v34 = vsel %vm1142_vm10, %v1110_v13, %v1174_v28 }
 0x1c4   : > { %v1100_v0 = vadd.f32 %v2088_v10, %v972_v49  ;;  %v1177_v46 = vmul.f32 0.2, %v1113_v9  ;;  %vm1145_vm13 = vcmp.ge.f32.partialorder %v1113_v9, 0.0  ;;  %v1207_v50 = vsel %vm1143_vm11, %v1111_v19, %v1175_v51 }
 0x1c5   : > { %vm1131_vm8 = vcmp.ge.f32.partialorder %v1099_v6, 0.0  ;;  %v1163_v59 = vmul.f32 0.2, %v1099_v6  ;;  %v1334_v49 = vmul.f32 %v1292_v42, %v1206_v34 }
 0x1c6   : > { %vm1132_vm9 = vcmp.ge.f32.partialorder %v1100_v0, 0.0  ;;  %v1164_v54 = vmul.f32 0.2, %v1100_v0  ;;  %v809_v36 = vpop.f32.mrf.mxu2  ;;  %v1209_v35 = vsel %vm1145_vm13, %v1113_v9, %v1177_v46 }
 0x1c7   : > { %v1195_v26 = vsel %vm1131_vm8, %v1099_v6, %v1163_v59  ;;  %v858_v10 = vpop.f32.mrf.mxu3  ;;  %v987_v31 = vmul.f32 %v2076_v2, %v809_v36  ;;  %v1335_v6 = vmul.f32 %v1297_v53, %v1207_v50 }
 0x1c8   : > { %v1323_v43 = vmul.f32 %v2128_v45, %v1195_v26  ;;  %v1196_v63 = vsel %vm1132_vm9, %v1100_v0, %v1164_v54  ;;  %v988_v7 = vmul.f32 %v2076_v2, %v858_v10  ;;  %v1176_v2 = vmul.f32 0.2, %v1112_v21  ;;  %v1302_v32 = vpop.permute.xlu0 %1301 }
 0x1c9   : > { %v1324_v3 = vmul.f32 %v2128_v45, %v1196_v63  ;;  %v1114_v45 = vadd.f32 %v2102_v40, %v986_v55  ;;  %v1115_v8 = vadd.f32 %v2240_v17, %v987_v31  ;;  %v1337_v48 = vmul.f32 %v1302_v32, %v1209_v35 }
 0x1ca   : > { %v1347_v15 = vadd.f32 %v1346_v57, %v1323_v43  ;;  %v1116_v47 = vadd.f32 %v2240_v17, %v988_v7  ;;  %v1208_v38 = vsel %vm1144_vm12, %v1112_v21, %v1176_v2  ;;  %v1389_v21 = vlaneseq }
 0x1cb   : > { %v1368_v25 = vadd.f32 %v1367_v20, %v1324_v3  ;;  %vm1146_vm14 = vcmp.ge.f32.partialorder %v1114_v45, 0.0  ;;  %v1179_v39 = vmul.f32 0.2, %v1115_v8  ;;  %vm1147_vm15 = vcmp.ge.f32.partialorder %v1115_v8, 0.0 }
 0x1cc   : > { %v1348_v41 = vadd.f32 %v1347_v15, %v2133_v33  ;;  %v1178_v33 = vmul.f32 0.2, %v1114_v45  ;;  %vm1148_vm0 = vcmp.ge.f32.partialorder %v1116_v47, 0.0  ;;  %v1336_v58 = vmul.f32 %v1297_v53, %v1208_v38 }
 0x1cd   : > { %v1369_v44 = vadd.f32 %v1368_v25, %v2136_v29  ;;  %v1211_v0 = vsel %vm1147_vm15, %v1115_v8, %v1179_v39  ;;  %vm1391_vm2 = vcmp.lt.s32.totalorder %v1389_v21, 256 }
 0x1ce   : > { %v1349_v62 = vadd.f32 %v1348_v41, %v2150_v18  ;;  %v1180_v18 = vmul.f32 0.2, %v1116_v47  ;;  %v1339_v36 = vmul.f32 %v1307_v14, %v1211_v0 }
 0x1cf   : > { %v1370_v40 = vadd.f32 %v1369_v44, %v2154_v27  ;;  %v1210_v27 = vsel %vm1146_vm14, %v1114_v45, %v1178_v33 }
 0x1d0   : > { %v1350_v60 = vadd.f32 %v1349_v62, %v2169_v24  ;;  %v1212_v59 = vsel %vm1148_vm0, %v1116_v47, %v1180_v18  ;;  %v1338_v12 = vmul.f32 %v1302_v32, %v1210_v27 }
 0x1d1   : > { %v1371_v29 = vadd.f32 %v1370_v40, %v1330_v56  ;;  %v1340_v37 = vmul.f32 %v1307_v14, %v1212_v59 }
 0x1d2   : > { %v1351_v1 = vadd.f32 %v1350_v60, %v1331_v52 }
 0x1d3   : > { %v1372_v23 = vadd.f32 %v1371_v29, %v1332_v11 }
 0x1d4   : > { %v1352_v13 = vadd.f32 %v1351_v1, %v1333_v5 }
 0x1d5   : > { %v1373_v24 = vadd.f32 %v1372_v23, %v1334_v49 }
 0x1d6   : > { %v1353_v22 = vadd.f32 %v1352_v13, %v1335_v6 }
 0x1d7   : > { %v1374_v54 = vadd.f32 %v1373_v24, %v1336_v58 }
 0x1d8   : > { %v1354_v61 = vadd.f32 %v1353_v22, %v1337_v48 }
 0x1d9   : > { %v1375_v4 = vadd.f32 %v1374_v54, %v1338_v12 }
 0x1da   : > { %v1355_v26 = vadd.f32 %v1354_v61, %v1339_v36 }
 0x1db   : > { %v1376_v10 = vadd.f32 %v1375_v4, %v1340_v37 }
 0x1dc   : > { %v1356_v57 = vrot.slane %v1355_v26, 4 }
 0x1dd   : > { %v1377_v55 = vrot.slane %v1376_v10, 4 }
 0x1de   : > { %v1357_v43 = vadd.f32 %v1356_v57, %v1355_v26 }
 0x1df   : > { %v1378_v63 = vadd.f32 %v1377_v55, %v1376_v10 }
 0x1e0   : > { %v1358_v19 = vrot.slane %v1357_v43, 2 }
 0x1e1   : > { %v1379_v20 = vrot.slane %v1378_v63, 2 }
 0x1e2   : > { %v1359_v3 = vadd.f32 %v1358_v19, %v1357_v43 }
 0x1e3   : > { %v1380_v31 = vadd.f32 %v1379_v20, %v1378_v63 }
 0x1e4   : > { %v1360_v30 = vrot.slane %v1359_v3, 1 }
 0x1e5   : > { %v1381_v56 = vrot.slane %v1380_v31, 1 }
 0x1e6   : > { %v1361_v7 = vadd.f32 %v1360_v30, %v1359_v3 }
 0x1e7   : > { %v1382_v15 = vadd.f32 %v1381_v56, %v1380_v31 }
 0x1e9   : > { %v1385_v52 = vrot.slane %v1382_v15, 7 }
 0x1eb   : > { %v1387_v11 = vsel %vm1386_vm1, %v1361_v7, %v1385_v52 }
 0x1ec   : > { %1393 = vst.msk [vmem:[%s278_s8] sm:$0x3] %vm1391_vm2, %v1387_v11 }
 0x1ed PF: > { %s17_s24 = sadd.s32 1, %s1553_s24  }
 0x1ee   : > { %p14_p5 = scmp.ge.s32.totalorder %s17_s24, 4  }
 0x1f0   :  { %16 = sbr.rel (!%p14_p5) target bundleno = 1 (0x1), region = 78 }

</bundles_post_ra>
